<compile_context>
chip_gen: v7x
topology: tpu7x:2x2x1
jax: 0.10.0
libtpu: 0.0.40
codegen_flags: <defaults>
</compile_context>

<pallas_src>
import functools

import jax
import jax.numpy as jnp
from jax import lax
from jax.experimental import pallas as pl
from jax.experimental.pallas import tpu as pltpu


# ------------------------------ fused kernel -------------------------------

def _row_shift(v, delta, pos, period):
    """out[r] = v[r + delta] if the source row stays inside the same
    length-`period` sample segment, else 0.0 ('same' zero padding).
    Samples are stacked back-to-back along rows, so the rows that wrap around
    in the roll are exactly the rows masked to zero.  jnp.roll lowers to
    slice+concat (robust in Mosaic and interpret mode)."""
    rolled = jnp.roll(v, -delta, axis=0)
    if delta < 0:
        edge = pos < (-delta)
    else:
        edge = pos >= (period - delta)
    return jnp.where(edge, 0.0, rolled)


def cnn1d_fused_kernel(x_ref, w1_ref, b1_ref, w2_ref, b2_ref,
                       fcw_ref, fcb_ref, clsw_ref, clsb_ref,
                       pre_ref, feat_ref,
                       h1_sc, h2_sc, *, TB, L):
    assert L % 4 == 0 and TB % 8 == 0
    C1 = w1_ref.shape[1]          # 16   (w1 is (3, C1))
    C2 = w2_ref.shape[1]          # 32   (w2 is im2col'd: (3*C1, C2))
    F = fcw_ref.shape[1]          # 256
    L1, L2 = L // 2, L // 4       # 16, 8
    R0, R1 = TB * L, TB * L1      # full-res / pooled row counts

    # ---- conv1 (Cin=1, K=3, pad=1) + ReLU: 3-tap FIR on the VPU ------------
    # x is a (TB*L, 1) column; the multiply against the (1, C1) tap rows
    # broadcasts implicitly (no explicit broadcast_to slab).
    xcol = x_ref[...].astype(jnp.float32)                         # (R0, 1)
    pos0 = lax.broadcasted_iota(jnp.int32, (R0, 1), 0) % L
    x_m1 = _row_shift(xcol, -1, pos0, L)                          # x[l-1]
    x_p1 = _row_shift(xcol, +1, pos0, L)                          # x[l+1]
    w1 = w1_ref[...].astype(jnp.float32)                          # (3, C1)
    h1 = (x_m1 * w1[0:1, :] + xcol * w1[1:2, :] + x_p1 * w1[2:3, :]
          + b1_ref[...])                                          # (R0, C1)
    h1_sc[...] = jnp.maximum(h1, 0.0)

    # ---- MaxPool1d(2): sublane-strided VMEM reads ---------------------------
    p1 = jnp.maximum(h1_sc[pl.ds(0, R1, 2), :],
                     h1_sc[pl.ds(1, R1, 2), :])                   # (R1, C1)

    # ---- conv2 (16->32, K=3, pad=1) + ReLU: single im2col MXU push ----------
    pos1 = lax.broadcasted_iota(jnp.int32, (R1, C1), 0) % L1
    p1_m1 = _row_shift(p1, -1, pos1, L1)
    p1_p1 = _row_shift(p1, +1, pos1, L1)
    slab = jnp.concatenate([p1_m1, p1, p1_p1], axis=1).astype(jnp.bfloat16)
    h2 = (jnp.dot(slab, w2_ref[...], preferred_element_type=jnp.float32)
          + b2_ref[...])                                          # (R1, C2)
    h2_sc[...] = jnp.maximum(h2, 0.0)

    # ---- MaxPool1d(2) fused with the channel-major flatten ------------------
    # p2row[b, j*C2 + c] = max(h2[b*L1 + 2j, c], h2[b*L1 + 2j + 1, c])
    pieces = []
    for j in range(L2):                      # static unroll, L2 = 8
        e = h2_sc[pl.ds(2 * j, TB, L1), :]
        o = h2_sc[pl.ds(2 * j + 1, TB, L1), :]
        pieces.append(jnp.maximum(e, o))
    p2row = jnp.concatenate(pieces, axis=1).astype(jnp.bfloat16)  # (TB, L2*C2)

    # ---- fc + ReLU: one (TB,256)x(256,256) MXU push --------------------------
    # (PyTorch flatten order is folded into the pre-permuted fc weights.)
    feat = jnp.maximum(
        jnp.dot(p2row, fcw_ref[...], preferred_element_type=jnp.float32)
        + fcb_ref[...], 0.0)                                      # (TB, F)
    feat_ref[...] = feat.astype(feat_ref.dtype)

    # ---- cls_fc: lane-padded (128) classifier head ---------------------------
    pre = (jnp.dot(feat.astype(jnp.bfloat16), clsw_ref[...],
                   preferred_element_type=jnp.float32) + clsb_ref[...])
    pre_ref[...] = pre.astype(pre_ref.dtype)


# ------------------------------ JAX wrapper --------------------------------

def cnn_1d_forward(params, x_ncl, *, tb=8):
    """CNN_1D.forward: returns (pre, feature).  x_ncl: (B, 1, L) PyTorch NCL."""
    B, Cin, L = x_ncl.shape
    assert Cin == 1, Cin
    C1 = params["conv1_w"].shape[2]
    C2 = params["conv2_w"].shape[2]
    F_in, F = params["fc_w"].shape
    L1, L2 = L // 2, L // 4
    # PyTorch backbone contract: flatten dim must equal fc input dim.
    assert L % 4 == 0 and L2 * C2 == F_in, "requires L == 32 for Linear(256, .)"
    num_classes = params["cls_w"].shape[1]
    NPAD = ((num_classes + 127) // 128) * 128     # lane-dense classifier out

    TB = tb                                       # batch tile (multiple of 8)
    Bp = ((B + TB - 1) // TB) * TB                # pad batch to a full tile

    # --- one-time weight massaging (outside the kernel) ----------------------
    w1_2d = params["conv1_w"][:, 0, :].astype(jnp.float32)             # (3, C1)
    w2col = params["conv2_w"].reshape(3 * C1, C2).astype(jnp.bfloat16)  # row = k*C1+ci
    # PyTorch flatten index is c*L2 + j; the kernel produces lane order j*C2 + c.
    fcw_perm = jnp.transpose(params["fc_w"].reshape(C2, L2, F),
                             (1, 0, 2)).reshape(L2 * C2, F).astype(jnp.bfloat16)
    clsw_pad = jnp.zeros((F, NPAD), jnp.bfloat16).at[:, :num_classes].set(
        params["cls_w"].astype(jnp.bfloat16))
    clsb_pad = jnp.zeros((1, NPAD), jnp.float32).at[0, :num_classes].set(
        params["cls_b"])

    xb = jnp.zeros((Bp, L), jnp.float32).at[:B].set(
        x_ncl[:, 0, :].astype(jnp.float32))
    x2d = xb.reshape(Bp * L, 1)                   # row index = b*L + l

    flops = int(Bp * 2 * (L * 3 * C1 + L1 * 3 * C1 * C2 + F_in * F + F * NPAD))
    bytes_accessed = int(
        4 * (Bp * L + Bp * (NPAD + F) + w1_2d.size + C1 + C2 + F + NPAD)
        + 2 * (w2col.size + fcw_perm.size + clsw_pad.size))

    kernel = functools.partial(cnn1d_fused_kernel, TB=TB, L=L)
    pre_pad, feature = pl.pallas_call(
        kernel,
        out_shape=(jax.ShapeDtypeStruct((Bp, NPAD), jnp.float32),
                   jax.ShapeDtypeStruct((Bp, F), jnp.float32)),
        grid=(Bp // TB,),
        in_specs=[
            pl.BlockSpec((TB * L, 1), lambda i: (i, 0)),        # x (batch tile)
            pl.BlockSpec((3, C1), lambda i: (0, 0)),            # conv1 taps
            pl.BlockSpec((1, C1), lambda i: (0, 0)),            # conv1 bias
            pl.BlockSpec((3 * C1, C2), lambda i: (0, 0)),       # conv2 im2col w
            pl.BlockSpec((1, C2), lambda i: (0, 0)),            # conv2 bias
            pl.BlockSpec((F_in, F), lambda i: (0, 0)),          # fc w (perm)
            pl.BlockSpec((1, F), lambda i: (0, 0)),             # fc bias
            pl.BlockSpec((F, NPAD), lambda i: (0, 0)),          # cls w (pad)
            pl.BlockSpec((1, NPAD), lambda i: (0, 0)),          # cls bias (pad)
        ],
        out_specs=(pl.BlockSpec((TB, NPAD), lambda i: (i, 0)),
                   pl.BlockSpec((TB, F), lambda i: (i, 0))),
        scratch_shapes=[pltpu.VMEM((TB * L, C1), jnp.float32),   # conv1 out
                        pltpu.VMEM((TB * L1, C2), jnp.float32)],  # conv2 out
        compiler_params=pltpu.CompilerParams(
            dimension_semantics=("parallel",),
            vmem_limit_bytes=32 * 1024 * 1024),
        cost_estimate=pl.CostEstimate(flops=flops, transcendentals=0,
                                      bytes_accessed=bytes_accessed),
    )(x2d, w1_2d, params["conv1_b"].reshape(1, C1).astype(jnp.float32),
      w2col, params["conv2_b"].reshape(1, C2).astype(jnp.float32),
      fcw_perm, params["fc_b"].reshape(1, F).astype(jnp.float32),
      clsw_pad, clsb_pad)

    return pre_pad[:B, :num_classes], feature[:B]


# ------------------------------- parameters --------------------------------

def init_params(key, num_classes=31):
    def uniform(k, shape, fan_in):
        bound = 1.0 / (float(fan_in) ** 0.5)
        return jax.random.uniform(k, shape, jnp.float32, -bound, bound)

    ks = jax.random.split(key, 8)
    return {
        # conv weights stored as (K, Cin, Cout)
        "conv1_w": uniform(ks[0], (3, 1, 16), 1 * 3),
        "conv1_b": uniform(ks[1], (16,), 1 * 3),
        "conv2_w": uniform(ks[2], (3, 16, 32), 16 * 3),
        "conv2_b": uniform(ks[3], (32,), 16 * 3),
        # fc weights stored as (in, out); `in` index = PyTorch flatten c*L2 + j
        "fc_w": uniform(ks[4], (256, 256), 256),
        "fc_b": uniform(ks[5], (256,), 256),
        "cls_w": uniform(ks[6], (256, num_classes), 256),
        "cls_b": uniform(ks[7], (num_classes,), 256),
    }


# ---------------------------------- main ------------------------------------

if __name__ == "__main__":
    key = jax.random.PRNGKey(0)
    pkey, xkey = jax.random.split(key)
    params = init_params(pkey, num_classes=31)
    x = jax.random.normal(xkey, (2, 1, 32), jnp.float32)   # (B, Cin=1, L)

    pre, feature = jax.jit(cnn_1d_forward)(params, x)
    jax.block_until_ready((pre, feature))

    assert pre.shape == (2, 31), pre.shape
    assert feature.shape == (2, 256), feature.shape
    print("KERNEL_OK")
</pallas_src>

<mosaic_0001>
module attributes {stable_mosaic.version = 11 : i64} {
  func.func @cnn1d_fused_kernel(%arg0: i32, %arg1: memref<256x1xf32, #tpu.memory_space<vmem>>, %arg2: memref<3x16xf32, #tpu.memory_space<vmem>>, %arg3: memref<1x16xf32, #tpu.memory_space<vmem>>, %arg4: memref<48x32xbf16, #tpu.memory_space<vmem>>, %arg5: memref<1x32xf32, #tpu.memory_space<vmem>>, %arg6: memref<256x256xbf16, #tpu.memory_space<vmem>>, %arg7: memref<1x256xf32, #tpu.memory_space<vmem>>, %arg8: memref<256x128xbf16, #tpu.memory_space<vmem>>, %arg9: memref<1x128xf32, #tpu.memory_space<vmem>>, %arg10: memref<8x128xf32, #tpu.memory_space<vmem>>, %arg11: memref<8x256xf32, #tpu.memory_space<vmem>>, %arg12: memref<256x16xf32, #tpu.memory_space<vmem>>, %arg13: memref<128x32xf32, #tpu.memory_space<vmem>>) attributes {dimension_semantics = [#tpu.dimension_semantics<parallel>], iteration_bounds = array<i64: 1>, scalar_prefetch = 0 : i64, scratch_operands = 2 : i64, tpu.core_type = #tpu.core_type<tc>, window_params = [{transform_indices = @transform_0, window_bounds = array<i64: 256, 1>}, {pipeline_mode = #tpu.pipeline_mode<synchronous>, transform_indices = @transform_1, window_bounds = array<i64: 3, 16>}, {pipeline_mode = #tpu.pipeline_mode<synchronous>, transform_indices = @transform_2, window_bounds = array<i64: 1, 16>}, {pipeline_mode = #tpu.pipeline_mode<synchronous>, transform_indices = @transform_3, window_bounds = array<i64: 48, 32>}, {pipeline_mode = #tpu.pipeline_mode<synchronous>, transform_indices = @transform_4, window_bounds = array<i64: 1, 32>}, {pipeline_mode = #tpu.pipeline_mode<synchronous>, transform_indices = @transform_5, window_bounds = array<i64: 256, 256>}, {pipeline_mode = #tpu.pipeline_mode<synchronous>, transform_indices = @transform_6, window_bounds = array<i64: 1, 256>}, {pipeline_mode = #tpu.pipeline_mode<synchronous>, transform_indices = @transform_7, window_bounds = array<i64: 256, 128>}, {pipeline_mode = #tpu.pipeline_mode<synchronous>, transform_indices = @transform_8, window_bounds = array<i64: 1, 128>}, {transform_indices = @transform_9, window_bounds = array<i64: 8, 128>}, {transform_indices = @transform_10, window_bounds = array<i64: 8, 256>}]} {
    %c0 = arith.constant 0 : index
    %c0_0 = arith.constant 0 : index
    %0 = vector.load %arg1[%c0, %c0_0] : memref<256x1xf32, #tpu.memory_space<vmem>>, vector<256x1xf32>
    %1 = tpu.iota {dimensions = array<i32: 0>} : vector<256x1xi32>
    %c32_i32 = arith.constant 32 : i32
    %c0_i32 = arith.constant 0 : i32
    %2 = arith.cmpi eq, %c32_i32, %c0_i32 : i32
    %c1_i32 = arith.constant 1 : i32
    %3 = arith.select %2, %c1_i32, %c32_i32 : i32
    %4 = vector.broadcast %3 : i32 to vector<256x1xi32>
    %5 = arith.remsi %1, %4 : vector<256x1xi32>
    %c0_i32_1 = arith.constant 0 : i32
    %6 = vector.broadcast %c0_i32_1 : i32 to vector<256x1xi32>
    %7 = arith.cmpi ne, %5, %6 : vector<256x1xi32>
    %c0_i32_2 = arith.constant 0 : i32
    %8 = vector.broadcast %c0_i32_2 : i32 to vector<256x1xi32>
    %9 = arith.cmpi slt, %5, %8 : vector<256x1xi32>
    %c0_i32_3 = arith.constant 0 : i32
    %10 = arith.cmpi slt, %3, %c0_i32_3 : i32
    %11 = vector.broadcast %10 : i1 to vector<256x1xi1>
    %12 = vector.broadcast %11 : vector<256x1xi1> to vector<256x1xi1>
    %13 = arith.xori %9, %12 : vector<256x1xi1>
    %14 = arith.andi %13, %7 : vector<256x1xi1>
    %15 = vector.broadcast %3 : i32 to vector<256x1xi32>
    %16 = arith.addi %5, %15 : vector<256x1xi32>
    %17 = arith.select %14, %16, %5 : vector<256x1xi1>, vector<256x1xi32>
    %18 = vector.extract_strided_slice %0 {offsets = [255, 0], sizes = [1, 1], strides = [1, 1]} : vector<256x1xf32> to vector<1x1xf32>
    %19 = vector.extract_strided_slice %0 {offsets = [0, 0], sizes = [255, 1], strides = [1, 1]} : vector<256x1xf32> to vector<255x1xf32>
    %20 = tpu.concatenate %18, %19 in 0 : vector<1x1xf32>, vector<255x1xf32> -> vector<256x1xf32>
    %c1_i32_4 = arith.constant 1 : i32
    %21 = vector.broadcast %c1_i32_4 : i32 to vector<256x1xi32>
    %22 = arith.cmpi slt, %17, %21 : vector<256x1xi32>
    %cst = arith.constant 0.000000e+00 : f32
    %23 = vector.broadcast %cst : f32 to vector<256x1xf32>
    %24 = arith.select %22, %23, %20 : vector<256x1xi1>, vector<256x1xf32>
    %25 = vector.extract_strided_slice %0 {offsets = [1, 0], sizes = [255, 1], strides = [1, 1]} : vector<256x1xf32> to vector<255x1xf32>
    %26 = vector.extract_strided_slice %0 {offsets = [0, 0], sizes = [1, 1], strides = [1, 1]} : vector<256x1xf32> to vector<1x1xf32>
    %27 = tpu.concatenate %25, %26 in 0 : vector<255x1xf32>, vector<1x1xf32> -> vector<256x1xf32>
    %c31_i32 = arith.constant 31 : i32
    %28 = vector.broadcast %c31_i32 : i32 to vector<256x1xi32>
    %29 = arith.cmpi sge, %17, %28 : vector<256x1xi32>
    %cst_5 = arith.constant 0.000000e+00 : f32
    %30 = vector.broadcast %cst_5 : f32 to vector<256x1xf32>
    %31 = arith.select %29, %30, %27 : vector<256x1xi1>, vector<256x1xf32>
    %c0_6 = arith.constant 0 : index
    %c0_7 = arith.constant 0 : index
    %32 = vector.load %arg2[%c0_6, %c0_7] : memref<3x16xf32, #tpu.memory_space<vmem>>, vector<3x16xf32>
    %33 = vector.extract_strided_slice %32 {offsets = [0, 0], sizes = [1, 16], strides = [1, 1]} : vector<3x16xf32> to vector<1x16xf32>
    %34 = vector.broadcast %24 : vector<256x1xf32> to vector<256x16xf32>
    %35 = vector.broadcast %33 : vector<1x16xf32> to vector<256x16xf32>
    %36 = arith.mulf %34, %35 : vector<256x16xf32>
    %37 = vector.extract_strided_slice %32 {offsets = [1, 0], sizes = [1, 16], strides = [1, 1]} : vector<3x16xf32> to vector<1x16xf32>
    %38 = vector.broadcast %0 : vector<256x1xf32> to vector<256x16xf32>
    %39 = vector.broadcast %37 : vector<1x16xf32> to vector<256x16xf32>
    %40 = arith.mulf %38, %39 : vector<256x16xf32>
    %41 = arith.addf %36, %40 : vector<256x16xf32>
    %42 = vector.extract_strided_slice %32 {offsets = [2, 0], sizes = [1, 16], strides = [1, 1]} : vector<3x16xf32> to vector<1x16xf32>
    %43 = vector.broadcast %31 : vector<256x1xf32> to vector<256x16xf32>
    %44 = vector.broadcast %42 : vector<1x16xf32> to vector<256x16xf32>
    %45 = arith.mulf %43, %44 : vector<256x16xf32>
    %46 = arith.addf %41, %45 : vector<256x16xf32>
    %c0_8 = arith.constant 0 : index
    %c0_9 = arith.constant 0 : index
    %47 = vector.load %arg3[%c0_8, %c0_9] : memref<1x16xf32, #tpu.memory_space<vmem>>, vector<1x16xf32>
    %48 = vector.broadcast %47 : vector<1x16xf32> to vector<256x16xf32>
    %49 = arith.addf %46, %48 : vector<256x16xf32>
    %cst_10 = arith.constant 0.000000e+00 : f32
    %50 = vector.broadcast %cst_10 : f32 to vector<256x16xf32>
    %51 = arith.maximumf %49, %50 : vector<256x16xf32>
    %c0_11 = arith.constant 0 : index
    %c0_12 = arith.constant 0 : index
    %52 = vector.load %arg12[%c0_11, %c0_12] : memref<256x16xf32, #tpu.memory_space<vmem>>, vector<256x16xf32>
    tpu.vector_store %arg12[%c0_11, %c0_12], %51 {strides = array<i32>} : memref<256x16xf32, #tpu.memory_space<vmem>>, vector<256x16xf32>,
    %c0_13 = arith.constant 0 : index
    %c0_14 = arith.constant 0 : index
    %53 = tpu.strided_load %arg12[%c0_13, %c0_14] {strides = array<i32: 2, 1>} : memref<256x16xf32, #tpu.memory_space<vmem>>, vector<128x16xf32>
    %c1 = arith.constant 1 : index
    %c0_15 = arith.constant 0 : index
    %54 = tpu.strided_load %arg12[%c1, %c0_15] {strides = array<i32: 2, 1>} : memref<256x16xf32, #tpu.memory_space<vmem>>, vector<128x16xf32>
    %55 = arith.maximumf %53, %54 : vector<128x16xf32>
    %56 = tpu.iota {dimensions = array<i32: 0>} : vector<128x16xi32>
    %c16_i32 = arith.constant 16 : i32
    %c0_i32_16 = arith.constant 0 : i32
    %57 = arith.cmpi eq, %c16_i32, %c0_i32_16 : i32
    %c1_i32_17 = arith.constant 1 : i32
    %58 = arith.select %57, %c1_i32_17, %c16_i32 : i32
    %59 = vector.broadcast %58 : i32 to vector<128x16xi32>
    %60 = arith.remsi %56, %59 : vector<128x16xi32>
    %c0_i32_18 = arith.constant 0 : i32
    %61 = vector.broadcast %c0_i32_18 : i32 to vector<128x16xi32>
    %62 = arith.cmpi ne, %60, %61 : vector<128x16xi32>
    %c0_i32_19 = arith.constant 0 : i32
    %63 = vector.broadcast %c0_i32_19 : i32 to vector<128x16xi32>
    %64 = arith.cmpi slt, %60, %63 : vector<128x16xi32>
    %c0_i32_20 = arith.constant 0 : i32
    %65 = arith.cmpi slt, %58, %c0_i32_20 : i32
    %66 = vector.broadcast %65 : i1 to vector<128x16xi1>
    %67 = vector.broadcast %66 : vector<128x16xi1> to vector<128x16xi1>
    %68 = arith.xori %64, %67 : vector<128x16xi1>
    %69 = arith.andi %68, %62 : vector<128x16xi1>
    %70 = vector.broadcast %58 : i32 to vector<128x16xi32>
    %71 = arith.addi %60, %70 : vector<128x16xi32>
    %72 = arith.select %69, %71, %60 : vector<128x16xi1>, vector<128x16xi32>
    %73 = vector.extract_strided_slice %55 {offsets = [127, 0], sizes = [1, 16], strides = [1, 1]} : vector<128x16xf32> to vector<1x16xf32>
    %74 = vector.extract_strided_slice %55 {offsets = [0, 0], sizes = [127, 16], strides = [1, 1]} : vector<128x16xf32> to vector<127x16xf32>
    %75 = tpu.concatenate %73, %74 in 0 : vector<1x16xf32>, vector<127x16xf32> -> vector<128x16xf32>
    %c1_i32_21 = arith.constant 1 : i32
    %76 = vector.broadcast %c1_i32_21 : i32 to vector<128x16xi32>
    %77 = arith.cmpi slt, %72, %76 : vector<128x16xi32>
    %cst_22 = arith.constant 0.000000e+00 : f32
    %78 = vector.broadcast %cst_22 : f32 to vector<128x16xf32>
    %79 = arith.select %77, %78, %75 : vector<128x16xi1>, vector<128x16xf32>
    %80 = vector.extract_strided_slice %55 {offsets = [1, 0], sizes = [127, 16], strides = [1, 1]} : vector<128x16xf32> to vector<127x16xf32>
    %81 = vector.extract_strided_slice %55 {offsets = [0, 0], sizes = [1, 16], strides = [1, 1]} : vector<128x16xf32> to vector<1x16xf32>
    %82 = tpu.concatenate %80, %81 in 0 : vector<127x16xf32>, vector<1x16xf32> -> vector<128x16xf32>
    %c15_i32 = arith.constant 15 : i32
    %83 = vector.broadcast %c15_i32 : i32 to vector<128x16xi32>
    %84 = arith.cmpi sge, %72, %83 : vector<128x16xi32>
    %cst_23 = arith.constant 0.000000e+00 : f32
    %85 = vector.broadcast %cst_23 : f32 to vector<128x16xf32>
    %86 = arith.select %84, %85, %82 : vector<128x16xi1>, vector<128x16xf32>
    %87 = tpu.concatenate %79, %55, %86 in 1 : vector<128x16xf32>, vector<128x16xf32>, vector<128x16xf32> -> vector<128x48xf32>
    %88 = arith.truncf %87 : vector<128x48xf32> to vector<128x48xbf16>
    %c0_24 = arith.constant 0 : index
    %c0_25 = arith.constant 0 : index
    %89 = vector.load %arg4[%c0_24, %c0_25] : memref<48x32xbf16, #tpu.memory_space<vmem>>, vector<48x32xbf16>
    %cst_26 = arith.constant dense<0.000000e+00> : vector<128x32xf32>
    %90 = tpu.matmul %88, %89, %cst_26 {dimension_numbers = #tpu.dot_dimension_numbers<[1], [0], [0], [1], [0, 0, 1, 1], [], []>} : vector<128x48xbf16>, vector<48x32xbf16>, vector<128x32xf32> -> vector<128x32xf32>
    %c0_27 = arith.constant 0 : index
    %c0_28 = arith.constant 0 : index
    %91 = vector.load %arg5[%c0_27, %c0_28] : memref<1x32xf32, #tpu.memory_space<vmem>>, vector<1x32xf32>
    %92 = vector.broadcast %91 : vector<1x32xf32> to vector<128x32xf32>
    %93 = arith.addf %90, %92 : vector<128x32xf32>
    %cst_29 = arith.constant 0.000000e+00 : f32
    %94 = vector.broadcast %cst_29 : f32 to vector<128x32xf32>
    %95 = arith.maximumf %93, %94 : vector<128x32xf32>
    %c0_30 = arith.constant 0 : index
    %c0_31 = arith.constant 0 : index
    %96 = vector.load %arg13[%c0_30, %c0_31] : memref<128x32xf32, #tpu.memory_space<vmem>>, vector<128x32xf32>
    tpu.vector_store %arg13[%c0_30, %c0_31], %95 {strides = array<i32>} : memref<128x32xf32, #tpu.memory_space<vmem>>, vector<128x32xf32>,
    %c0_32 = arith.constant 0 : index
    %c0_33 = arith.constant 0 : index
    %97 = tpu.strided_load %arg13[%c0_32, %c0_33] {strides = array<i32: 16, 1>} : memref<128x32xf32, #tpu.memory_space<vmem>>, vector<8x32xf32>
    %c1_34 = arith.constant 1 : index
    %c0_35 = arith.constant 0 : index
    %98 = tpu.strided_load %arg13[%c1_34, %c0_35] {strides = array<i32: 16, 1>} : memref<128x32xf32, #tpu.memory_space<vmem>>, vector<8x32xf32>
    %99 = arith.maximumf %97, %98 : vector<8x32xf32>
    %c2 = arith.constant 2 : index
    %c0_36 = arith.constant 0 : index
    %100 = tpu.strided_load %arg13[%c2, %c0_36] {strides = array<i32: 16, 1>} : memref<128x32xf32, #tpu.memory_space<vmem>>, vector<8x32xf32>
    %c3 = arith.constant 3 : index
    %c0_37 = arith.constant 0 : index
    %101 = tpu.strided_load %arg13[%c3, %c0_37] {strides = array<i32: 16, 1>} : memref<128x32xf32, #tpu.memory_space<vmem>>, vector<8x32xf32>
    %102 = arith.maximumf %100, %101 : vector<8x32xf32>
    %c4 = arith.constant 4 : index
    %c0_38 = arith.constant 0 : index
    %103 = tpu.strided_load %arg13[%c4, %c0_38] {strides = array<i32: 16, 1>} : memref<128x32xf32, #tpu.memory_space<vmem>>, vector<8x32xf32>
    %c5 = arith.constant 5 : index
    %c0_39 = arith.constant 0 : index
    %104 = tpu.strided_load %arg13[%c5, %c0_39] {strides = array<i32: 16, 1>} : memref<128x32xf32, #tpu.memory_space<vmem>>, vector<8x32xf32>
    %105 = arith.maximumf %103, %104 : vector<8x32xf32>
    %c6 = arith.constant 6 : index
    %c0_40 = arith.constant 0 : index
    %106 = tpu.strided_load %arg13[%c6, %c0_40] {strides = array<i32: 16, 1>} : memref<128x32xf32, #tpu.memory_space<vmem>>, vector<8x32xf32>
    %c7 = arith.constant 7 : index
    %c0_41 = arith.constant 0 : index
    %107 = tpu.strided_load %arg13[%c7, %c0_41] {strides = array<i32: 16, 1>} : memref<128x32xf32, #tpu.memory_space<vmem>>, vector<8x32xf32>
    %108 = arith.maximumf %106, %107 : vector<8x32xf32>
    %c8 = arith.constant 8 : index
    %c0_42 = arith.constant 0 : index
    %109 = tpu.strided_load %arg13[%c8, %c0_42] {strides = array<i32: 16, 1>} : memref<128x32xf32, #tpu.memory_space<vmem>>, vector<8x32xf32>
    %c9 = arith.constant 9 : index
    %c0_43 = arith.constant 0 : index
    %110 = tpu.strided_load %arg13[%c9, %c0_43] {strides = array<i32: 16, 1>} : memref<128x32xf32, #tpu.memory_space<vmem>>, vector<8x32xf32>
    %111 = arith.maximumf %109, %110 : vector<8x32xf32>
    %c10 = arith.constant 10 : index
    %c0_44 = arith.constant 0 : index
    %112 = tpu.strided_load %arg13[%c10, %c0_44] {strides = array<i32: 16, 1>} : memref<128x32xf32, #tpu.memory_space<vmem>>, vector<8x32xf32>
    %c11 = arith.constant 11 : index
    %c0_45 = arith.constant 0 : index
    %113 = tpu.strided_load %arg13[%c11, %c0_45] {strides = array<i32: 16, 1>} : memref<128x32xf32, #tpu.memory_space<vmem>>, vector<8x32xf32>
    %114 = arith.maximumf %112, %113 : vector<8x32xf32>
    %c12 = arith.constant 12 : index
    %c0_46 = arith.constant 0 : index
    %115 = tpu.strided_load %arg13[%c12, %c0_46] {strides = array<i32: 16, 1>} : memref<128x32xf32, #tpu.memory_space<vmem>>, vector<8x32xf32>
    %c13 = arith.constant 13 : index
    %c0_47 = arith.constant 0 : index
    %116 = tpu.strided_load %arg13[%c13, %c0_47] {strides = array<i32: 16, 1>} : memref<128x32xf32, #tpu.memory_space<vmem>>, vector<8x32xf32>
    %117 = arith.maximumf %115, %116 : vector<8x32xf32>
    %c14 = arith.constant 14 : index
    %c0_48 = arith.constant 0 : index
    %118 = tpu.strided_load %arg13[%c14, %c0_48] {strides = array<i32: 16, 1>} : memref<128x32xf32, #tpu.memory_space<vmem>>, vector<8x32xf32>
    %c15 = arith.constant 15 : index
    %c0_49 = arith.constant 0 : index
    %119 = tpu.strided_load %arg13[%c15, %c0_49] {strides = array<i32: 16, 1>} : memref<128x32xf32, #tpu.memory_space<vmem>>, vector<8x32xf32>
    %120 = arith.maximumf %118, %119 : vector<8x32xf32>
    %121 = tpu.concatenate %99, %102, %105, %108, %111, %114, %117, %120 in 1 : vector<8x32xf32>, vector<8x32xf32>, vector<8x32xf32>, vector<8x32xf32>, vector<8x32xf32>, vector<8x32xf32>, vector<8x32xf32>, vector<8x32xf32> -> vector<8x256xf32>
    %122 = arith.truncf %121 : vector<8x256xf32> to vector<8x256xbf16>
    %c0_50 = arith.constant 0 : index
    %c0_51 = arith.constant 0 : index
    %123 = vector.load %arg6[%c0_50, %c0_51] : memref<256x256xbf16, #tpu.memory_space<vmem>>, vector<256x256xbf16>
    %cst_52 = arith.constant dense<0.000000e+00> : vector<8x256xf32>
    %124 = tpu.matmul %122, %123, %cst_52 {dimension_numbers = #tpu.dot_dimension_numbers<[1], [0], [0], [1], [0, 0, 1, 1], [], []>} : vector<8x256xbf16>, vector<256x256xbf16>, vector<8x256xf32> -> vector<8x256xf32>
    %c0_53 = arith.constant 0 : index
    %c0_54 = arith.constant 0 : index
    %125 = vector.load %arg7[%c0_53, %c0_54] : memref<1x256xf32, #tpu.memory_space<vmem>>, vector<1x256xf32>
    %126 = vector.broadcast %125 : vector<1x256xf32> to vector<8x256xf32>
    %127 = arith.addf %124, %126 : vector<8x256xf32>
    %cst_55 = arith.constant 0.000000e+00 : f32
    %128 = vector.broadcast %cst_55 : f32 to vector<8x256xf32>
    %129 = arith.maximumf %127, %128 : vector<8x256xf32>
    %c0_56 = arith.constant 0 : index
    %c0_57 = arith.constant 0 : index
    %130 = vector.load %arg11[%c0_56, %c0_57] : memref<8x256xf32, #tpu.memory_space<vmem>>, vector<8x256xf32>
    tpu.vector_store %arg11[%c0_56, %c0_57], %129 {strides = array<i32>} : memref<8x256xf32, #tpu.memory_space<vmem>>, vector<8x256xf32>,
    %131 = arith.truncf %129 : vector<8x256xf32> to vector<8x256xbf16>
    %c0_58 = arith.constant 0 : index
    %c0_59 = arith.constant 0 : index
    %132 = vector.load %arg8[%c0_58, %c0_59] : memref<256x128xbf16, #tpu.memory_space<vmem>>, vector<256x128xbf16>
    %cst_60 = arith.constant dense<0.000000e+00> : vector<8x128xf32>
    %133 = tpu.matmul %131, %132, %cst_60 {dimension_numbers = #tpu.dot_dimension_numbers<[1], [0], [0], [1], [0, 0, 1, 1], [], []>} : vector<8x256xbf16>, vector<256x128xbf16>, vector<8x128xf32> -> vector<8x128xf32>
    %c0_61 = arith.constant 0 : index
    %c0_62 = arith.constant 0 : index
    %134 = vector.load %arg9[%c0_61, %c0_62] : memref<1x128xf32, #tpu.memory_space<vmem>>, vector<1x128xf32>
    %135 = vector.broadcast %134 : vector<1x128xf32> to vector<8x128xf32>
    %136 = arith.addf %133, %135 : vector<8x128xf32>
    %c0_63 = arith.constant 0 : index
    %c0_64 = arith.constant 0 : index
    %137 = vector.load %arg10[%c0_63, %c0_64] : memref<8x128xf32, #tpu.memory_space<vmem>>, vector<8x128xf32>
    tpu.vector_store %arg10[%c0_63, %c0_64], %136 {strides = array<i32>} : memref<8x128xf32, #tpu.memory_space<vmem>>, vector<8x128xf32>,
    return
  }
  func.func @transform_0(%arg0: i32) -> (i32, i32) {
    %c0_i32 = arith.constant 0 : i32
    %c0_i32_0 = arith.constant 0 : i32
    return %arg0, %c0_i32 : i32, i32
  }
  func.func @transform_1(%arg0: i32) -> (i32, i32) {
    %c0_i32 = arith.constant 0 : i32
    %c0_i32_0 = arith.constant 0 : i32
    %c0_i32_1 = arith.constant 0 : i32
    return %c0_i32, %c0_i32_0 : i32, i32
  }
  func.func @transform_2(%arg0: i32) -> (i32, i32) {
    %c0_i32 = arith.constant 0 : i32
    %c0_i32_0 = arith.constant 0 : i32
    %c0_i32_1 = arith.constant 0 : i32
    return %c0_i32, %c0_i32_0 : i32, i32
  }
  func.func @transform_3(%arg0: i32) -> (i32, i32) {
    %c0_i32 = arith.constant 0 : i32
    %c0_i32_0 = arith.constant 0 : i32
    %c0_i32_1 = arith.constant 0 : i32
    return %c0_i32, %c0_i32_0 : i32, i32
  }
  func.func @transform_4(%arg0: i32) -> (i32, i32) {
    %c0_i32 = arith.constant 0 : i32
    %c0_i32_0 = arith.constant 0 : i32
    %c0_i32_1 = arith.constant 0 : i32
    return %c0_i32, %c0_i32_0 : i32, i32
  }
  func.func @transform_5(%arg0: i32) -> (i32, i32) {
    %c0_i32 = arith.constant 0 : i32
    %c0_i32_0 = arith.constant 0 : i32
    %c0_i32_1 = arith.constant 0 : i32
    return %c0_i32, %c0_i32_0 : i32, i32
  }
  func.func @transform_6(%arg0: i32) -> (i32, i32) {
    %c0_i32 = arith.constant 0 : i32
    %c0_i32_0 = arith.constant 0 : i32
    %c0_i32_1 = arith.constant 0 : i32
    return %c0_i32, %c0_i32_0 : i32, i32
  }
  func.func @transform_7(%arg0: i32) -> (i32, i32) {
    %c0_i32 = arith.constant 0 : i32
    %c0_i32_0 = arith.constant 0 : i32
    %c0_i32_1 = arith.constant 0 : i32
    return %c0_i32, %c0_i32_0 : i32, i32
  }
  func.func @transform_8(%arg0: i32) -> (i32, i32) {
    %c0_i32 = arith.constant 0 : i32
    %c0_i32_0 = arith.constant 0 : i32
    %c0_i32_1 = arith.constant 0 : i32
    return %c0_i32, %c0_i32_0 : i32, i32
  }
  func.func @transform_9(%arg0: i32) -> (i32, i32) {
    %c0_i32 = arith.constant 0 : i32
    %c0_i32_0 = arith.constant 0 : i32
    return %arg0, %c0_i32 : i32, i32
  }
  func.func @transform_10(%arg0: i32) -> (i32, i32) {
    %c0_i32 = arith.constant 0 : i32
    %c0_i32_0 = arith.constant 0 : i32
    return %arg0, %c0_i32 : i32, i32
  }
}

</mosaic_0001>

<bundles_post_ra>
// kernel: cnn_1d_forward.1
= control target key start
LH: loop header
LB: loop body
LE: loop exit
PB: predicated region body
PF: predicated region fallthrough
CT: control target
= control target key end

     0   :  { %v67_v0 = vlaneseq  ;;  %v3242_v1 = vmov 0   ;;  %vm518_vm0 = vcmask 1040384   ;;  %vm678_vm4 = vcmask 1046528   ;;  %s3244_s19 = smov 32   ;;  %s3245_s20 = smov 64   ;;  %s4456_s0 = inlined_call_operand.vmem [shape: f32[256,1], index: 0, kind: input, shape index: {}]   ;;  %s4457_s1 = inlined_call_operand.vmem [shape: f32[3,16], index: 1, kind: input, shape index: {}]   ;;  %s4458_s2 = inlined_call_operand.vmem [shape: f32[1,16], index: 2, kind: input, shape index: {}]   ;;  %s4459_s3 = inlined_call_operand.vmem [shape: bf16[48,32], index: 3, kind: input, shape index: {}]   ;;  %s4460_s4 = inlined_call_operand.vmem [shape: f32[1,32], index: 4, kind: input, shape index: {}]   ;;  %s4461_s5 = inlined_call_operand.vmem [shape: bf16[256,256], index: 5, kind: input, shape index: {}]   ;;  %s4462_s7 = inlined_call_operand.vmem [shape: bf16[256,128], index: 7, kind: input, shape index: {}]   ;;  %s4463_s6 = inlined_call_operand.vmem [shape: f32[1,256], index: 6, kind: input, shape index: {}]   ;;  %s4464_s10 = inlined_call_operand.vmem [shape: f32[8,256], index: 10, kind: output, shape index: {1}]   ;;  %s4465_s8 = inlined_call_operand.vmem [shape: f32[1,128], index: 8, kind: input, shape index: {}]   ;;  %s4466_s9 = inlined_call_operand.vmem [shape: f32[8,128], index: 9, kind: output, shape index: {0}]  }
   0x1   :  { %3079 = vset.pattern.permute.xlu1 %v3242_v1  ;;  %3078 = vset.pattern.permute.xlu0 %v3242_v1  ;;  %v3305_v2 = vld [vmem:[%s4456_s0 + $0x20] sm:$0xff]  ;;  %v3310_v3 = vld [vmem:[%s4456_s0 + $0x28] sm:$0xff]  ;;  %v3322_v7 = vld [vmem:[%s4456_s0 + $0x10] sm:$0xff]  ;;  %s3246_s27 = smov 96  }
   0x2   :  { %v3315_v4 = vld [vmem:[%s4456_s0 + $0x8] sm:$0xff]  ;;  %v526_v5 = vrot.slane %v3305_v2, 7  ;;  %v528_v6 = vrot.slane %v3310_v3, 7  ;;  %v3328_v9 = vld [vmem:[%s4456_s0 + $0x18] sm:$0xff]  ;;  %v3330_v10 = vshrl.u32 %v67_v0, 7  ;;  %v522_v11 = vrot.slane %v3322_v7, 7 }
   0x3   :  { %v520_v8 = vrot.slane %v3315_v4, 7  ;;  %v524_v12 = vrot.slane %v3328_v9, 7  ;;  %v3346_v19 = vld [vmem:[%s4456_s0] sm:$0xff]  ;;  %v3351_v20 = vld [vmem:[%s4456_s0 + $0xf8] sm:$0xff]  ;;  %v3360_v25 = vld [vmem:[%s4456_s0 + $0x30] sm:$0xff]  ;;  %v684_v44 = vrot.slane %v3328_v9, 1 }
   0x4   :  { %v529_v13 = vsel %vm518_vm0, %v526_v5, %v528_v6  ;;  %v3336_v14 = vadd.s32 32, %v3330_v10  ;;  %v104_v22 = vand.u32 31, %v3330_v10  ;;  %v485_v23 = vrot.slane %v3351_v20, 7  ;;  %v3365_v26 = vld [vmem:[%s4456_s0 + $0x38] sm:$0xff]  ;;  %v3377_v29 = vld [vmem:[%s4456_s0 + $0x40] sm:$0xff]  ;;  %v3386_v34 = vld [vmem:[%s4456_s0 + $0x48] sm:$0xff] }
   0x5   :  { %868 = vperm.xlu1 %3079, %v529_v13   ;;  %v523_v15 = vsel %vm518_vm0, %v520_v8, %v522_v11  ;;  %v525_v17 = vsel %vm518_vm0, %v522_v11, %v524_v12  ;;  %v527_v18 = vsel %vm518_vm0, %v524_v12, %v526_v5  ;;  %v519_v24 = vrot.slane %v3346_v19, 7  ;;  %v3423_v57 = vld [vmem:[%s4456_s0 + $0xf0] sm:$0xff]  ;;  %v3461_v11 = vld [vmem:[%s4456_s0 + $0x60] sm:$0xff] }
   0x6   :  { %853 = vperm.xlu0 %3078, %v523_v15   ;;  %v132_v16 = vand.u32 31, %v3336_v14  ;;  %vm614_vm2 = vcmp.lt.s32.totalorder %v104_v22, 1  ;;  %v3371_v28 = vadd.s32 64, %v3330_v10  ;;  %v530_v31 = vrot.slane %v3360_v25, 7 }
   0x7   :  { %v613_v27 = vsel %vm518_vm0, %v485_v23, %v519_v24  ;;  %v521_v30 = vsel %vm518_vm0, %v519_v24, %v520_v8  ;;  %v532_v32 = vrot.slane %v3365_v26, 7  ;;  %v534_v36 = vrot.slane %v3377_v29, 7  ;;  %v3453_v8 = vld [vmem:[%s4456_s0 + $0x58] sm:$0xff] }
   0x8   :  { %vm618_vm1 = vcmp.lt.s32.totalorder %v132_v16, 1  ;;  %v646_v33 = vsel %vm614_vm2, 0.0, %v613_v27  ;;  %v160_v35 = vand.u32 31, %v3371_v28  ;;  %v536_v38 = vrot.slane %v3386_v34, 7 }
   0x9   :  { %1050 = vperm.xlu1 %3079, %v3328_v9   ;;  %v650_v21 = vsel %vm618_vm1, 0.0, %v527_v18  ;;  %v533_v37 = vsel %vm518_vm0, %v530_v31, %v532_v32  ;;  %v531_v39 = vsel %vm518_vm0, %v528_v6, %v530_v31  ;;  %v535_v40 = vsel %vm518_vm0, %v532_v32, %v534_v36  ;;  %v51_v32 = vld [vmem:[%s4456_s0 + $0x80] sm:$0xff] }
   0xa   :  { %858 = vperm.xlu0 %3078, %v525_v17   ;;  %vm622_vm3 = vcmp.lt.s32.totalorder %v160_v35, 1  ;;  %v537_v41 = vsel %vm518_vm0, %v534_v36, %v536_v38  ;;  %v3398_v43 = vadd.s32 24, %v3330_v10  ;;  %v686_v46 = vrot.slane %v3305_v2, 1  ;;  %v3472_v17 = vld [vmem:[%s4456_s0 + $0x68] sm:$0xff] }
   0xb   :  { %v654_v42 = vsel %vm622_vm3, 0.0, %v535_v40  ;;  %v682_v47 = vrot.slane %v3322_v7, 1  ;;  %v688_v50 = vrot.slane %v3310_v3, 1  ;;  %v690_v51 = vrot.slane %v3360_v25, 1  ;;  %v3498_v35 = vld [vmem:[%s4456_s0 + $0x88] sm:$0xff] }
   0xc   :  { %v125_v45 = vand.u32 31, %v3398_v43  ;;  %v687_v48 = vsel %vm678_vm4, %v684_v44, %v686_v46  ;;  %v3415_v53 = vadd.s32 56, %v3330_v10  ;;  %v680_v56 = vrot.slane %v3315_v4, 1 }
   0xd   :  { %863 = vperm.xlu1 %3079, %v650_v21   ;;  %v685_v52 = vsel %vm678_vm4, %v682_v47, %v684_v44  ;;  %v689_v54 = vsel %vm678_vm4, %v686_v46, %v688_v50  ;;  %v691_v55 = vsel %vm678_vm4, %v688_v50, %v690_v51  ;;  %v679_v58 = vrot.slane %v3346_v19, 1 }
   0xe   :  { %1046 = vperm.xlu0 %3078, %v3322_v7   ;;  %vm779_vm5 = vcmp.ge.s32.totalorder %v125_v45, 31  ;;  %v692_v59 = vrot.slane %v3365_v26, 1  ;;  %v153_v60 = vand.u32 31, %v3415_v53  ;;  %v694_v61 = vrot.slane %v3377_v29, 1 }
   0xf   :  { %v811_v49 = vsel %vm779_vm5, 0.0, %v687_v48  ;;  %v578_v62 = vrot.slane %v3423_v57, 7  ;;  %v683_v63 = vsel %vm678_vm4, %v680_v56, %v682_v47  ;;  %v681_v0 = vsel %vm678_vm4, %v679_v58, %v680_v56 }
  0x10   :  { %v695_v1 = vsel %vm678_vm4, %v692_v59, %v694_v61  ;;  %vm783_vm6 = vcmp.ge.s32.totalorder %v153_v60, 31  ;;  %v696_v5 = vrot.slane %v3386_v34, 1  ;;  %v693_v7 = vsel %vm678_vm4, %v690_v51, %v692_v59 }
  0x11   :  { %1058 = vperm.xlu1 %3079, %v3310_v3   ;;  %v3445_v3 = vsel %vm518_vm0, %v578_v62, %v485_v23  ;;  %v3456_v9 = vadd.s32 96, %v3330_v10  ;;  %v540_v15 = vrot.slane %v3453_v8, 7  ;;  %v542_v21 = vrot.slane %v3461_v11, 7 }
  0x12   :  { %1054 = vperm.xlu0 %3078, %v3305_v2   ;;  %v3438_v2 = vld [vmem:[%s4456_s0 + $0x50] sm:$0xff]  ;;  %v697_v16 = vsel %vm678_vm4, %v694_v61, %v696_v5  ;;  %v544_v23 = vrot.slane %v3472_v17, 7  ;;  %v84_v31 = vadd.s32 128, %v3330_v10  ;;  %v3508_v45 = vadd.s32 88, %v3330_v10 }
  0x13   :  { %v698_v6 = vrot.slane %v3438_v2, 1  ;;  %v538_v13 = vrot.slane %v3438_v2, 7  ;;  %v188_v18 = vand.u32 31, %v3456_v9  ;;  %v700_v46 = vrot.slane %v3453_v8, 1 }
  0x14   :  { %v216_v36 = vand.u32 31, %v84_v31  ;;  %v181_v47 = vand.u32 31, %v3508_v45  ;;  %v702_v48 = vrot.slane %v3461_v11, 1  ;;  %v3515_v50 = vadd.s32 120, %v3330_v10 }
  0x15   :  { %848 = vperm.xlu1 %3079, %v521_v30   ;;  %v699_v12 = vsel %vm678_vm4, %v696_v5, %v698_v6  ;;  %v541_v22 = vsel %vm518_vm0, %v538_v13, %v540_v15  ;;  %v539_v24 = vsel %vm518_vm0, %v536_v38, %v538_v13  ;;  %vm626_vm7 = vcmp.lt.s32.totalorder %v188_v18, 1  ;;  %v50_v30 = vld [vmem:[%s4456_s0 + $0x78] sm:$0xff] }
  0x16   :  { %843 = vperm.xlu0 %3078, %v646_v33   ;;  %vm630_vm8 = vcmp.lt.s32.totalorder %v216_v36, 1  ;;  %vm787_vm9 = vcmp.ge.s32.totalorder %v181_v47, 31  ;;  %v708_v56 = vrot.slane %v50_v30, 1  ;;  %v209_v59 = vand.u32 31, %v3515_v50 }
  0x17   :  { %v710_v60 = vrot.slane %v51_v32, 1  ;;  %v92_v31 = vadd.s32 192, %v3330_v10  ;;  %vm1532_vm1 = vcmask 130048  }
  0x18   :  { %vm791_vm10 = vcmp.ge.s32.totalorder %v209_v59, 31  ;;  %v91_v59 = vadd.s32 184, %v3330_v10 }
  0x19   :  { %878 = vperm.xlu1 %3079, %v533_v37   ;;  %v550_v37 = vrot.slane %v51_v32, 7  ;;  %v272_v36 = vand.u32 31, %v92_v31 }
  0x1a   :  { %873 = vperm.xlu0 %3078, %v531_v39   ;;  %v552_v39 = vrot.slane %v3498_v35, 7 }
  0x1b   :  { %vm638_vm12 = vcmp.lt.s32.totalorder %v272_v36, 1 }
  0x1d   :  { %888 = vperm.xlu1 %3079, %v537_v41  }
  0x1e   :  { %883 = vperm.xlu0 %3078, %v654_v42   ;;  %v553_v42 = vsel %vm518_vm0, %v550_v37, %v552_v39 }
  0x21   :  { %1042 = vperm.xlu1 %3079, %v3315_v4   ;;  %v815_v4 = vsel %vm783_vm6, 0.0, %v695_v1  ;;  %v3529_v1 = vld [vmem:[%s4456_s0 + $0x90] sm:$0xff] }
  0x22   :  { %1038 = vperm.xlu0 %3078, %v3346_v19   ;;  %v714_v5 = vrot.slane %v3529_v1, 1  ;;  %v554_v13 = vrot.slane %v3529_v1, 7 }
  0x25   :  { %1066 = vperm.xlu1 %3079, %v3365_v26   ;;  %v545_v26 = vsel %vm518_vm0, %v542_v21, %v544_v23 }
  0x26   :  { %1062 = vperm.xlu0 %3078, %v3360_v25   ;;  %v543_v25 = vsel %vm518_vm0, %v540_v15, %v542_v21 }
  0x27   :  { %v658_v27 = vsel %vm626_vm7, 0.0, %v543_v25 }
  0x29   :  { %1074 = vperm.xlu1 %3079, %v3386_v34   ;;  %v548_v34 = vrot.slane %v50_v30, 7 }
  0x2a   :  { %1070 = vperm.xlu0 %3078, %v3377_v29   ;;  %v49_v29 = vld [vmem:[%s4456_s0 + $0x70] sm:$0xff] }
  0x2b   :  { %v546_v33 = vrot.slane %v49_v29, 7  ;;  %v551_v41 = vsel %vm518_vm0, %v548_v34, %v550_v37 }
  0x2c   :  { %v662_v44 = vsel %vm630_vm8, 0.0, %v551_v41 }
  0x2d   :  { %1250 = vperm.xlu1 %3079, %v811_v49   ;;  %v549_v38 = vsel %vm518_vm0, %v546_v33, %v548_v34  ;;  %v547_v40 = vsel %vm518_vm0, %v544_v23, %v546_v33  ;;  %v703_v49 = vsel %vm678_vm4, %v700_v46, %v702_v48 }
  0x2e   :  { %1245 = vperm.xlu0 %3078, %v685_v52   ;;  %v819_v51 = vsel %vm787_vm9, 0.0, %v703_v49  ;;  %v704_v52 = vrot.slane %v3472_v17, 1 }
  0x31   :  { %1260 = vperm.xlu1 %3079, %v691_v55   ;;  %v701_v55 = vsel %vm678_vm4, %v698_v6, %v700_v46  ;;  %v87_v46 = vadd.s32 152, %v3330_v10 }
  0x32   :  { %1255 = vperm.xlu0 %3078, %v689_v54   ;;  %v706_v54 = vrot.slane %v49_v29, 1 }
  0x34   :  { %v707_v61 = vsel %vm678_vm4, %v704_v52, %v706_v54  ;;  %v709_v6 = vsel %vm678_vm4, %v706_v54, %v708_v56 }
  0x35   :  { %1240 = vperm.xlu1 %3079, %v683_v63   ;;  %v705_v63 = vsel %vm678_vm4, %v702_v48, %v704_v52 }
  0x36   :  { %1235 = vperm.xlu0 %3078, %v681_v0   ;;  %v711_v0 = vsel %vm678_vm4, %v708_v56, %v710_v60 }
  0x39   :  { %1270 = vperm.xlu1 %3079, %v815_v4   ;;  %v712_v4 = vrot.slane %v3498_v35, 1 }
  0x3a   :  { %1265 = vperm.xlu0 %3078, %v693_v7   ;;  %v3537_v7 = vld [vmem:[%s4456_s0 + $0x98] sm:$0xff] }
  0x3b   :  { %v556_v15 = vrot.slane %v3537_v7, 7  ;;  %v716_v49 = vrot.slane %v3537_v7, 1 }
  0x3d   :  { %1280 = vperm.xlu1 %3079, %v699_v12   ;;  %v715_v12 = vsel %vm678_vm4, %v712_v4, %v714_v5 }
  0x3e   :  { %1275 = vperm.xlu0 %3078, %v697_v16   ;;  %v713_v16 = vsel %vm678_vm4, %v710_v60, %v712_v4  ;;  %v717_v4 = vsel %vm678_vm4, %v714_v5, %v716_v49 }
  0x41   :  { %898 = vperm.xlu1 %3079, %v541_v22   ;;  %v557_v22 = vsel %vm518_vm0, %v554_v13, %v556_v15 }
  0x42   :  { %893 = vperm.xlu0 %3078, %v539_v24   ;;  %v555_v24 = vsel %vm518_vm0, %v552_v39, %v554_v13 }
  0x45   :  { %908 = vperm.xlu1 %3079, %v545_v26  }
  0x46   :  { %903 = vperm.xlu0 %3078, %v658_v27  }
  0x49   :  { %1082 = vperm.xlu1 %3079, %v3453_v8   ;;  %v88_v8 = vadd.s32 160, %v3330_v10 }
  0x4a   :  { %1078 = vperm.xlu0 %3078, %v3438_v2   ;;  %v823_v2 = vsel %vm791_vm10, 0.0, %v711_v0 }
  0x4b   :  { %v244_v18 = vand.u32 31, %v88_v8 }
  0x4d   :  { %1090 = vperm.xlu1 %3079, %v3472_v17   ;;  %v3554_v17 = vld [vmem:[%s4456_s0 + $0xa8] sm:$0xff]  ;;  %vm634_vm11 = vcmp.lt.s32.totalorder %v244_v18, 1 }
  0x4e   :  { %1086 = vperm.xlu0 %3078, %v3461_v11   ;;  %v3543_v11 = vld [vmem:[%s4456_s0 + $0xa0] sm:$0xff]  ;;  %v560_v23 = vrot.slane %v3554_v17, 7  ;;  %v720_v0 = vrot.slane %v3554_v17, 1 }
  0x4f   :  { %v558_v21 = vrot.slane %v3543_v11, 7  ;;  %v718_v52 = vrot.slane %v3543_v11, 1 }
  0x51   :  { %918 = vperm.xlu1 %3079, %v549_v38   ;;  %v559_v25 = vsel %vm518_vm0, %v556_v15, %v558_v21  ;;  %v561_v26 = vsel %vm518_vm0, %v558_v21, %v560_v23  ;;  %v719_v56 = vsel %vm678_vm4, %v716_v49, %v718_v52  ;;  %v721_v15 = vsel %vm678_vm4, %v718_v52, %v720_v0 }
  0x52   :  { %913 = vperm.xlu0 %3078, %v547_v40   ;;  %v666_v27 = vsel %vm634_vm11, 0.0, %v559_v25  ;;  %v1167_v52 = vsub.s32 1, %v3330_v10 }
  0x55   :  { %928 = vperm.xlu1 %3079, %v553_v42  }
  0x56   :  { %923 = vperm.xlu0 %3078, %v662_v44  }
  0x59   :  { %1098 = vperm.xlu1 %3079, %v50_v30   ;;  %v3570_v30 = vld [vmem:[%s4456_s0 + $0xb8] sm:$0xff] }
  0x5a   :  { %1094 = vperm.xlu0 %3078, %v49_v29   ;;  %v3565_v29 = vld [vmem:[%s4456_s0 + $0xb0] sm:$0xff]  ;;  %v564_v34 = vrot.slane %v3570_v30, 7 }
  0x5b   :  { %v562_v33 = vrot.slane %v3565_v29, 7 }
  0x5d   :  { %1106 = vperm.xlu1 %3079, %v3498_v35   ;;  %v3585_v35 = vld [vmem:[%s4456_s0 + $0xc8] sm:$0xff]  ;;  %v565_v38 = vsel %vm518_vm0, %v562_v33, %v564_v34  ;;  %v563_v40 = vsel %vm518_vm0, %v560_v23, %v562_v33 }
  0x5e   :  { %1102 = vperm.xlu0 %3078, %v51_v32   ;;  %v3577_v32 = vld [vmem:[%s4456_s0 + $0xc0] sm:$0xff]  ;;  %v568_v39 = vrot.slane %v3585_v35, 7  ;;  %v728_v21 = vrot.slane %v3585_v35, 1 }
  0x5f   :  { %v566_v37 = vrot.slane %v3577_v32, 7  ;;  %v726_v8 = vrot.slane %v3577_v32, 1 }
  0x61   :  { %1290 = vperm.xlu1 %3079, %v819_v51   ;;  %v567_v41 = vsel %vm518_vm0, %v564_v34, %v566_v37  ;;  %v569_v42 = vsel %vm518_vm0, %v566_v37, %v568_v39  ;;  %v237_v51 = vand.u32 31, %v87_v46  ;;  %v729_v33 = vsel %vm678_vm4, %v726_v8, %v728_v21  ;;  %v3668_v34 = vld [vmem:[%s4456_s0 + $0xe8] sm:$0xff] }
  0x62   :  { %1285 = vperm.xlu0 %3078, %v701_v55   ;;  %v670_v44 = vsel %vm638_vm12, 0.0, %v567_v41 }
  0x63   :  { %vm795_vm13 = vcmp.ge.s32.totalorder %v237_v51, 31  ;;  %v3745_v51 = vld [vmem:[%s4458_s2] ss:$0 sm:$0xff]  ;;  %s3243_s2 = smov 16  }
  0x65   :  { %1300 = vperm.xlu1 %3079, %v707_v61  }
  0x66   :  { %1295 = vperm.xlu0 %3078, %v705_v63   ;;  %v827_v63 = vsel %vm795_vm13, 0.0, %v719_v56 }
  0x69   :  { %1310 = vperm.xlu1 %3079, %v823_v2   ;;  %v722_v2 = vrot.slane %v3565_v29, 1 }
  0x6a   :  { %1305 = vperm.xlu0 %3078, %v709_v6   ;;  %v724_v6 = vrot.slane %v3570_v30, 1 }
  0x6b   :  { %v723_v13 = vsel %vm678_vm4, %v720_v0, %v722_v2 }
  0x6c   :  { %v725_v23 = vsel %vm678_vm4, %v722_v2, %v724_v6  ;;  %v95_v2 = vadd.s32 216, %v3330_v10 }
  0x6d   :  { %1320 = vperm.xlu1 %3079, %v715_v12  }
  0x6e   :  { %1315 = vperm.xlu0 %3078, %v713_v16   ;;  %v727_v16 = vsel %vm678_vm4, %v724_v6, %v726_v8 }
  0x71   :  { %938 = vperm.xlu1 %3079, %v557_v22  }
  0x72   :  { %933 = vperm.xlu0 %3078, %v555_v24   ;;  %v3647_v24 = vld [vmem:[%s4456_s0 + $0xd8] sm:$0xff] }
  0x75   :  { %948 = vperm.xlu1 %3079, %v561_v26   ;;  %v96_v26 = vadd.s32 224, %v3330_v10 }
  0x76   :  { %943 = vperm.xlu0 %3078, %v666_v27  }
  0x77   :  { %v300_v37 = vand.u32 31, %v96_v26 }
  0x79   :  { %1114 = vperm.xlu1 %3079, %v3537_v7   ;;  %v265_v7 = vand.u32 31, %v91_v59  ;;  %vm3681_vm15 = vcmp.lt.s32.totalorder %v300_v37, 1 }
  0x7a   :  { %1110 = vperm.xlu0 %3078, %v3529_v1   ;;  %v3635_v1 = vld [vmem:[%s4456_s0 + $0xd0] sm:$0xff] }
  0x7b   :  { %vm799_vm14 = vcmp.ge.s32.totalorder %v265_v7, 31  ;;  %v730_v22 = vrot.slane %v3635_v1, 1  ;;  %v570_v31 = vrot.slane %v3635_v1, 7  ;;  %v1395_v7 = vsub.s32 2, %v3330_v10 }
  0x7c   :  { %v831_v18 = vsel %vm799_vm14, 0.0, %v727_v16  ;;  %v293_v16 = vand.u32 31, %v95_v2 }
  0x7d   :  { %1122 = vperm.xlu1 %3079, %v3554_v17  }
  0x7e   :  { %1118 = vperm.xlu0 %3078, %v3543_v11   ;;  %vm3728_vm2 = vcmp.ge.s32.totalorder %v293_v16, 31 }
  0x81   :  { %958 = vperm.xlu1 %3079, %v565_v38  }
  0x82   :  { %953 = vperm.xlu0 %3078, %v563_v40  }
  0x84   :  { %v3598_v47 = vpop.permute.xlu1 %868 }
  0x85   :  { %v3600_v48 = vpop.permute.xlu0 %853  ;;  %968 = vperm.xlu1 %3079, %v569_v42   ;;  %v576_v42 = vrot.slane %v3668_v34, 7 }
  0x86   :  { %963 = vperm.xlu0 %3078, %v670_v44   ;;  %v571_v44 = vsel %vm518_vm0, %v568_v39, %v570_v31  ;;  %v840_v39 = vld [vmem:[%s4457_s1] sm:$0x7] }
  0x88   :  { %v3604_v54 = vpop.permute.xlu1 %1050 }
  0x89   :  { %v3606_v55 = vpop.permute.xlu0 %858  ;;  %1130 = vperm.xlu1 %3079, %v3570_v30   ;;  %v731_v30 = vsel %vm678_vm4, %v728_v21, %v730_v22 }
  0x8a   :  { %1126 = vperm.xlu0 %3078, %v3565_v29   ;;  %v3657_v29 = vld [vmem:[%s4456_s0 + $0xe0] sm:$0xff] }
  0x8b   :  { %v574_v38 = vrot.slane %v3657_v29, 7 }
  0x8c   :  { %v3612_v60 = vpop.permute.xlu1 %863 }
  0x8d   :  { %v3614_v61 = vpop.permute.xlu0 %1046  ;;  %1138 = vperm.xlu1 %3079, %v3585_v35   ;;  %v577_v59 = vsel %vm518_vm0, %v574_v38, %v576_v42 }
  0x8e   :  { %1134 = vperm.xlu0 %3078, %v3577_v32   ;;  %v572_v32 = vrot.slane %v3647_v24, 7 }
  0x90   :  { %v3625_v11 = vpop.permute.xlu1 %1058  ;;  %v573_v41 = vsel %vm518_vm0, %v570_v31, %v572_v32  ;;  %v575_v49 = vsel %vm518_vm0, %v572_v32, %v574_v38 }
  0x91   :  { %v3627_v12 = vpop.permute.xlu0 %1054  ;;  %1330 = vperm.xlu1 %3079, %v827_v63   ;;  %v1003_v63 = vsub.s32 0, %v3330_v10  ;;  %v674_v35 = vsel %vm3681_vm15, 0.0, %v575_v49  ;;  %vm2142_vm15 = vcmask 261120  }
  0x92   :  { %1325 = vperm.xlu0 %3078, %v717_v4   ;;  %v3698_v4 = vrot.slane %v840_v39, %v1167_v52 }
  0x93   :  { %v3705_v8 = vrot.slane %v840_v39, %v1003_v63 }
  0x94   :  { %v3637_v5 = vpop.permute.xlu1 %848  ;;  %v1172_v21 = vmul.f32 %v3698_v4, %v3604_v54  ;;  %v1171_v31 = vmul.f32 %v3698_v4, %v3614_v61  ;;  %v1174_v61 = vmul.f32 %v3698_v4, %v3625_v11  ;;  %v1173_v49 = vmul.f32 %v3698_v4, %v3627_v12 }
  0x95   :  { %v3639_v17 = vpop.permute.xlu0 %843  ;;  %1340 = vperm.xlu1 %3079, %v723_v13   ;;  %v1007_v32 = vmul.f32 %v3705_v8, %v3600_v48  ;;  %v579_v48 = vsel %vm518_vm0, %v576_v42, %v578_v62  ;;  %v1010_v62 = vmul.f32 %v3705_v8, %v3598_v47 }
  0x96   :  { %1335 = vperm.xlu0 %3078, %v721_v15   ;;  %v732_v15 = vrot.slane %v3647_v24, 1 }
  0x97   :  { %v1206_v2 = vadd.f32 %v1174_v61, %v1010_v62 }
  0x98   :  { %v3649_v25 = vpop.permute.xlu1 %878 }
  0x99   :  { %v3652_v27 = vpop.permute.xlu0 %873  ;;  %1350 = vperm.xlu1 %3079, %v831_v18   ;;  %v734_v18 = vrot.slane %v3657_v29, 1 }
  0x9a   :  { %1345 = vperm.xlu0 %3078, %v725_v23   ;;  %v1008_v23 = vmul.f32 %v3705_v8, %v3606_v55 }
  0x9b   :  { %v3726_v54 = vsel %vm678_vm4, %v732_v15, %v734_v18 }
  0x9c   :  { %v3670_v36 = vpop.permute.xlu1 %888  ;;  %v1204_v37 = vadd.f32 %v1172_v21, %v1008_v23  ;;  %v835_v12 = vsel %vm3728_vm2, 0.0, %v3726_v54 }
  0x9d   :  { %v3673_v40 = vpop.permute.xlu0 %883  ;;  %1360 = vperm.xlu1 %3079, %v731_v30   ;;  %v3718_v30 = vrot.slane %v840_v39, %v1395_v7 }
  0x9e   :  { %1355 = vperm.xlu0 %3078, %v729_v33  }
  0xa0   :  { %v1043_v46 = vpop.permute.xlu1 %1042 }
  0xa1   :  { %v1039_v56 = vpop.permute.xlu0 %1038  ;;  %978 = vperm.xlu1 %3079, %v573_v41   ;;  %v1170_v47 = vmul.f32 %v3698_v4, %v1043_v46 }
  0xa2   :  { %973 = vperm.xlu0 %3078, %v571_v44   ;;  %v1203_v44 = vadd.f32 %v1171_v31, %v1007_v32  ;;  %v1006_v31 = vmul.f32 %v3705_v8, %v3637_v5 }
  0xa4   :  { %v3693_v0 = vpop.permute.xlu1 %1066  ;;  %v1202_v61 = vadd.f32 %v1170_v47, %v1006_v31 }
  0xa5   :  { %v3700_v6 = vpop.permute.xlu0 %1062  ;;  %988 = vperm.xlu1 %3079, %v577_v59   ;;  %v738_v59 = vrot.slane %v3423_v57, 1 }
  0xa6   :  { %983 = vperm.xlu0 %3078, %v674_v35   ;;  %v1009_v35 = vmul.f32 %v3705_v8, %v3612_v60  ;;  %v1169_v60 = vmul.f32 %v3698_v4, %v1039_v56 }
  0xa8   :  { %v3707_v13 = vpop.permute.xlu1 %1074  ;;  %v1205_v21 = vadd.f32 %v1173_v49, %v1009_v35 }
  0xa9   :  { %v3715_v26 = vpop.permute.xlu0 %1070  ;;  %1146 = vperm.xlu1 %3079, %v3647_v24   ;;  %v736_v24 = vrot.slane %v3668_v34, 1  ;;  %v1178_v47 = vmul.f32 %v3698_v4, %v3707_v13  ;;  %v1014_v13 = vmul.f32 %v3705_v8, %v3670_v36 }
  0xaa   :  { %1142 = vperm.xlu0 %3078, %v3635_v1  }
  0xab   :  { %v3763_v1 = vsel %vm678_vm4, %v734_v18, %v736_v24  ;;  %v1210_v31 = vadd.f32 %v1178_v47, %v1014_v13 }
  0xac   :  { %v1251_v33 = vpop.permute.xlu1 %1250 }
  0xad   :  { %v1246_v38 = vpop.permute.xlu0 %1245  ;;  %v1400_v41 = vmul.f32 %v3718_v30, %v1251_v33  ;;  %1154 = vperm.xlu1 %3079, %v3668_v34   ;;  %v3752_v34 = vsel %vm678_vm4, %v730_v22, %v732_v15  ;;  %v99_v22 = vadd.s32 248, %v3330_v10  ;;  %v739_v33 = vsel %vm678_vm4, %v736_v24, %v738_v59 }
  0xae   :  { %v1399_v11 = vmul.f32 %v3718_v30, %v1246_v38  ;;  %1150 = vperm.xlu0 %3078, %v3657_v29   ;;  %v1176_v38 = vmul.f32 %v3698_v4, %v3693_v0  ;;  %v1012_v0 = vmul.f32 %v3705_v8, %v3649_v25 }
  0xaf   :  { %v1432_v42 = vadd.f32 %v1400_v41, %v1204_v37  ;;  %v740_v37 = vrot.slane %v3351_v20, 1 }
  0xb0   :  { %v1431_v39 = vadd.f32 %v1399_v11, %v1203_v44  ;;  %v1261_v29 = vpop.permute.xlu1 %1260 }
  0xb1   :  { %v1471_v7 = vadd.f32 %v3745_v51, %v1432_v42  ;;  %v1256_v15 = vpop.permute.xlu0 %1255  ;;  %v1402_v16 = vmul.f32 %v3718_v30, %v1261_v29  ;;  %998 = vperm.xlu1 %3079, %v3445_v3   ;;  %v1005_v3 = vmul.f32 %v3705_v8, %v3639_v17  ;;  %v1175_v17 = vmul.f32 %v3698_v4, %v3700_v6 }
  0xb2   :  { %v1470_v23 = vadd.f32 %v3745_v51, %v1431_v39  ;;  %v1401_v18 = vmul.f32 %v3718_v30, %v1256_v15  ;;  %993 = vperm.xlu0 %3078, %v579_v48   ;;  %v321_v42 = vand.u32 31, %v99_v22  ;;  %v775_v29 = vsel %vm678_vm4, %v740_v37, %v679_v58 }
  0xb3   :  { %v1503_v32 = vmax.f32 %v1471_v7, 0.0  ;;  %v1434_v46 = vadd.f32 %v1402_v16, %v1206_v2  ;;  %v1201_v24 = vadd.f32 %v1169_v60, %v1005_v3  ;;  %v1208_v2 = vadd.f32 %v1176_v38, %v1012_v0 }
  0xb4   :  { %v1502_v54 = vmax.f32 %v1470_v23, 0.0  ;;  %v1433_v55 = vadd.f32 %v1401_v18, %v1205_v21  ;;  %v1241_v56 = vpop.permute.xlu1 %1240  ;;  %v1177_v15 = vmul.f32 %v3698_v4, %v3715_v26  ;;  %vm3813_vm3 = vcmp.ge.s32.totalorder %v321_v42, 31 }
  0xb5   :  { %1536 = vst.msk [vmem:[#allocation2 + $0x18] sm:$0xff] %vm1532_vm1, %v1503_v32  ;;  %v1473_v5 = vadd.f32 %v3745_v51, %v1434_v46  ;;  %v1236_v41 = vpop.permute.xlu0 %1235  ;;  %v1398_v48 = vmul.f32 %v3718_v30, %v1241_v56  ;;  %1162 = vperm.xlu1 %3079, %v3351_v20   ;;  %v1011_v20 = vmul.f32 %v3705_v8, %v3652_v27  ;;  %v839_v56 = vsel %vm3813_vm3, 0.0, %v775_v29 }
  0xb6   :  { %1535 = vst.msk [vmem:[#allocation2 + $0x10] sm:$0xff] %vm1532_vm1, %v1502_v54  ;;  %v1472_v44 = vadd.f32 %v3745_v51, %v1433_v55  ;;  %v1397_v49 = vmul.f32 %v3718_v30, %v1236_v41  ;;  %1158 = vperm.xlu0 %3078, %v3423_v57   ;;  %v1013_v26 = vmul.f32 %v3705_v8, %v3673_v40  ;;  %v1669_v60 = vand.u32 15, %v3398_v43 }
  0xb7   :  { %v1505_v11 = vmax.f32 %v1473_v5, 0.0  ;;  %v1430_v62 = vadd.f32 %v1398_v48, %v1202_v61  ;;  %v1207_v27 = vadd.f32 %v1175_v17, %v1011_v20  ;;  %v69_v5 = vadd.s32 8, %v3330_v10 }
  0xb8   :  { %v1504_v35 = vmax.f32 %v1472_v44, 0.0  ;;  %v1429_v39 = vadd.f32 %v1397_v49, %v1201_v24  ;;  %v1271_v6 = vpop.permute.xlu1 %1270  ;;  %v1209_v54 = vadd.f32 %v1177_v15, %v1013_v26  ;;  %v1676_v43 = vand.u32 15, %v3336_v14  ;;  %v3175_v14 = vld [vmem:[%s4459_s3] sm:$0xff]  }
  0xb9   :  { %1538 = vst.msk [vmem:[#allocation2 + $0x28] sm:$0xff] %vm1532_vm1, %v1505_v11  ;;  %v1469_v25 = vadd.f32 %v3745_v51, %v1430_v62  ;;  %v1266_v7 = vpop.permute.xlu0 %1265  ;;  %v1404_v22 = vmul.f32 %v3718_v30, %v1271_v6  ;;  %1370 = vperm.xlu1 %3079, %v835_v12   ;;  %v1655_v11 = vand.u32 15, %v69_v5  ;;  %vm3866_vm6 = vcmp.ge.s32.totalorder %v1669_v60, 15  ;;  %v3176_v5 = vld [vmem:[%s4459_s3 + $0x8] sm:$0xff]   ;;  %3051 = vmatprep.subr.bf16.mxu0 %v3175_v14 }
  0xba   :  { %1537 = vst.msk [vmem:[#allocation2 + $0x20] sm:$0xff] %vm1532_vm1, %v1504_v35  ;;  %v1468_v19 = vadd.f32 %v3745_v51, %v1429_v39  ;;  %v1403_v58 = vmul.f32 %v3718_v30, %v1266_v7  ;;  %1365 = vperm.xlu0 %3078, %v3752_v34   ;;  %vm3884_vm7 = vcmp.lt.s32.totalorder %v1676_v43, 1  ;;  %3052 = vmatpush3.bf16.msra.mxu0 %v3175_v14 }
  0xbb   :  { %v1501_v16 = vmax.f32 %v1469_v25, 0.0  ;;  %v1436_v21 = vadd.f32 %v1404_v22, %v1208_v2  ;;  %vm1983_vm5 = vcmp.ge.s32.totalorder %v1655_v11, 15  ;;  %3053 = vmatprep.subr.bf16.mxu0 %v3176_v5 }
  0xbc   :  { %v1500_v12 = vmax.f32 %v1468_v19, 0.0  ;;  %v1435_v23 = vadd.f32 %v1403_v58, %v1207_v27  ;;  %v1281_v18 = vpop.permute.xlu1 %1280 }
  0xbd   :  { %1534 = vst.msk [vmem:[#allocation2 + $0x8] sm:$0xff] %vm1532_vm1, %v1501_v16  ;;  %v1475_v34 = vadd.f32 %v3745_v51, %v1436_v21  ;;  %v1276_v32 = vpop.permute.xlu0 %1275  ;;  %v1406_v36 = vmul.f32 %v3718_v30, %v1281_v18  ;;  %1380 = vperm.xlu1 %3079, %v739_v33   ;;  %v1567_v46 = vld [vmem:[#allocation2 + $0x10] ss:$2 sm:$0xff]  ;;  %v1599_v3 = vld [vmem:[#allocation2 + $0x11] ss:$2 sm:$0xff]  ;;  %v741_v33 = vsel %vm678_vm4, %v738_v59, %v740_v37 }
  0xbe   :  { %1533 = vst.msk [vmem:[#allocation2] sm:$0xff] %vm1532_vm1, %v1500_v12  ;;  %v1474_v55 = vadd.f32 %v3745_v51, %v1435_v23  ;;  %v1405_v40 = vmul.f32 %v3718_v30, %v1276_v32  ;;  %1375 = vperm.xlu0 %3078, %v3763_v1   ;;  %v1629_v17 = vmax.f32 %v1567_v46, %v1599_v3 }
  0xbf   :  { %v1507_v61 = vmax.f32 %v1475_v34, 0.0  ;;  %v1438_v38 = vadd.f32 %v1406_v36, %v1210_v31  ;;  %3054 = vmatpush3.bf16.msra.mxu0 %v3176_v5 }
  0xc0   :  { %v1506_v41 = vmax.f32 %v1474_v55, 0.0  ;;  %v1437_v48 = vadd.f32 %v1405_v40, %v1209_v54  ;;  %v3832_v24 = vpop.permute.xlu1 %898  ;;  %v1855_v20 = vrot.slane %v1629_v17, 7  ;;  %v1934_v47 = vrot.slane %v1629_v17, 1 }
  0xc1   :  { %1540 = vst.msk [vmem:[#allocation2 + $0x38] sm:$0xff] %vm1532_vm1, %v1507_v61  ;;  %v1477_v1 = vadd.f32 %v3745_v51, %v1438_v38  ;;  %v3836_v44 = vpop.permute.xlu0 %893  ;;  %1390 = vperm.xlu1 %3079, %v839_v56   ;;  %v1569_v49 = vld [vmem:[#allocation2 + $0x20] ss:$2 sm:$0xff]  ;;  %v1601_v0 = vld [vmem:[#allocation2 + $0x21] ss:$2 sm:$0xff] }
  0xc2   :  { %1539 = vst.msk [vmem:[#allocation2 + $0x30] sm:$0xff] %vm1532_vm1, %v1506_v41  ;;  %v1476_v57 = vadd.f32 %v3745_v51, %v1437_v48  ;;  %1385 = vperm.xlu0 %3078, %v741_v33   ;;  %v1630_v59 = vmax.f32 %v1569_v49, %v1601_v0 }
  0xc3   :  { %v1509_v37 = vmax.f32 %v1477_v1, 0.0 }
  0xc4   :  { %v1508_v62 = vmax.f32 %v1476_v57, 0.0  ;;  %v3840_v42 = vpop.permute.xlu1 %908  ;;  %v1936_v35 = vrot.slane %v1630_v59, 1  ;;  %v1857_v39 = vrot.slane %v1630_v59, 7 }
  0xc5   :  { %1542 = vst.msk [vmem:[#allocation2 + $0x48] sm:$0xff] %vm1532_vm1, %v1509_v37  ;;  %v3843_v6 = vpop.permute.xlu0 %903  ;;  %v1565_v29 = vld [vmem:[#allocation2] ss:$2 sm:$0xff]  ;;  %v1597_v2 = vld [vmem:[#allocation2 + $0x1] ss:$2 sm:$0xff] }
  0xc6   :  { %1541 = vst.msk [vmem:[#allocation2 + $0x40] sm:$0xff] %vm1532_vm1, %v1508_v62  ;;  %v3846_v25 = vmax.f32 %v1565_v29, %v1597_v2  ;;  %v3849_v7 = vsel %vm518_vm0, %v1855_v20, %v1857_v39  ;;  %v1937_v22 = vsel %vm678_vm4, %v1934_v47, %v1936_v35 }
  0xc7   :  { %v1999_v12 = vsel %vm1983_vm5, 0.0, %v1937_v22 }
  0xc8   :  { %v1083_v27 = vpop.permute.xlu1 %1082  ;;  %v3080_v15 = vpack.i.bf16 %v1629_v17, %v3846_v25  ;;  %v1933_v19 = vrot.slane %v3846_v25, 1  ;;  %v1854_v58 = vrot.slane %v3846_v25, 7 }
  0xc9   :  { %v1079_v13 = vpop.permute.xlu0 %1078  ;;  %v1571_v16 = vld [vmem:[#allocation2 + $0x30] ss:$2 sm:$0xff]  ;;  %v1603_v21 = vld [vmem:[#allocation2 + $0x31] ss:$2 sm:$0xff]  ;;  %v1180_v2 = vmul.f32 %v3698_v4, %v1083_v27 }
  0xca   :  { %3081 = vrot.lane.b32.xlu0 %v3080_v15, %s3243_s2  ;;  %v1935_v26 = vsel %vm678_vm4, %v1933_v19, %v1934_v47  ;;  %v1631_v23 = vmax.f32 %v1571_v16, %v1603_v21  ;;  %v3863_v31 = vsel %vm518_vm0, %v1854_v58, %v1855_v20  ;;  %v3177_v20 = vld [vmem:[%s4459_s3 + $0x10] sm:$0xff]   ;;  %v1179_v22 = vmul.f32 %v3698_v4, %v1079_v13 }
  0xcb   :  { %v3090_v18 = vpack.i.bf16 %v1999_v12, %v1935_v26  ;;  %3055 = vmatprep.subr.bf16.mxu0 %v3177_v20  ;;  %v1016_v15 = vmul.f32 %v3705_v8, %v3832_v24  ;;  %v1015_v16 = vmul.f32 %v3705_v8, %v3836_v44  ;;  %v1018_v13 = vmul.f32 %v3705_v8, %v3840_v42 }
  0xcc   :  { %v1091_v34 = vpop.permute.xlu1 %1090  ;;  %v3085_v32 = vpack.i.bf16 %v1631_v23, %v1630_v59  ;;  %v1859_v36 = vrot.slane %v1631_v23, 7  ;;  %v1938_v56 = vrot.slane %v1631_v23, 1  ;;  %3056 = vmatpush3.bf16.msra.mxu0 %v3177_v20  ;;  %v1017_v24 = vmul.f32 %v3705_v8, %v3843_v6 }
  0xcd   :  { %v1087_v46 = vpop.permute.xlu0 %1086  ;;  %v1573_v3 = vld [vmem:[#allocation2 + $0x40] ss:$2 sm:$0xff]  ;;  %v1605_v54 = vld [vmem:[#allocation2 + $0x41] ss:$2 sm:$0xff]  ;;  %v1212_v60 = vadd.f32 %v1180_v2, %v1016_v15  ;;  %v1182_v26 = vmul.f32 %v3698_v4, %v1091_v34 }
  0xce   :  { %3091 = vrot.lane.b32.xlu0 %v3090_v18, %s3244_s19  ;;  %3086 = vrot.lane.b32.xlu1 %v3085_v32, %s3243_s2  ;;  %v3872_v40 = vmax.f32 %v1573_v3, %v1605_v54  ;;  %v3875_v61 = vsel %vm518_vm0, %v1857_v39, %v1859_v36  ;;  %v1939_v49 = vsel %vm678_vm4, %v1936_v35, %v1938_v56 }
  0xcf   :  { %v1211_v18 = vadd.f32 %v1179_v22, %v1015_v16  ;;  %v1181_v32 = vmul.f32 %v3698_v4, %v1087_v46  ;;  %v1214_v3 = vadd.f32 %v1182_v26, %v1018_v13 }
  0xd0   :  { %v919_v38 = vpop.permute.xlu1 %918  ;;  %v1940_v33 = vrot.slane %v3872_v40, 1  ;;  %v1861_v17 = vrot.slane %v3872_v40, 7 }
  0xd1   :  { %v914_v48 = vpop.permute.xlu0 %913  ;;  %v1213_v46 = vadd.f32 %v1181_v32, %v1017_v24 }
  0xd2   :  { %v1941_v1 = vsel %vm678_vm4, %v1938_v56, %v1940_v33  ;;  %v3898_v57 = vsel %vm518_vm0, %v1859_v36, %v1861_v17 }
  0xd3   :  { %v2001_v0 = vsel %vm3866_vm6, 0.0, %v1941_v1  ;;  %v1921_v11 = vsel %vm3884_vm7, 0.0, %v3898_v57  ;;  %v1020_v1 = vmul.f32 %v3705_v8, %v919_v38 }
  0xd4   :  { %v929_v59 = vpop.permute.xlu1 %928  ;;  %v3095_v37 = vpack.i.bf16 %v2001_v0, %v1939_v49  ;;  %v1019_v0 = vmul.f32 %v3705_v8, %v914_v48 }
  0xd5   :  { %v924_v62 = vpop.permute.xlu0 %923  ;;  %v1022_v26 = vmul.f32 %v3705_v8, %v929_v59 }
  0xd6   :  { %3096 = vrot.lane.b32.xlu1 %v3095_v37, %s3244_s19 }
  0xd8   :  { %v1099_v35 = vpop.permute.xlu1 %1098 }
  0xd9   :  { %v1095_v39 = vpop.permute.xlu0 %1094  ;;  %v1184_v34 = vmul.f32 %v3698_v4, %v1099_v35 }
  0xda   :  { %v1183_v14 = vmul.f32 %v3698_v4, %v1095_v39 }
  0xdb   :  { %v1216_v2 = vadd.f32 %v1184_v34, %v1020_v1 }
  0xdc   :  { %v1107_v29 = vpop.permute.xlu1 %1106 }
  0xdd   :  { %v1103_v47 = vpop.permute.xlu0 %1102  ;;  %v1186_v22 = vmul.f32 %v3698_v4, %v1107_v29 }
  0xde   :  { %v1185_v38 = vmul.f32 %v3698_v4, %v1103_v47 }
  0xdf   :  { %v1218_v13 = vadd.f32 %v1186_v22, %v1022_v26 }
  0xe0   :  { %v1291_v21 = vpop.permute.xlu1 %1290 }
  0xe1   :  { %v1286_v12 = vpop.permute.xlu0 %1285  ;;  %v1408_v23 = vmul.f32 %v3718_v30, %v1291_v21  ;;  %v1215_v21 = vadd.f32 %v1183_v14, %v1019_v0 }
  0xe2   :  { %v1407_v27 = vmul.f32 %v3718_v30, %v1286_v12 }
  0xe3   :  { %v1440_v36 = vadd.f32 %v1408_v23, %v1212_v60  ;;  %v1021_v23 = vmul.f32 %v3705_v8, %v924_v62 }
  0xe4   :  { %v1439_v44 = vadd.f32 %v1407_v27, %v1211_v18  ;;  %v1301_v43 = vpop.permute.xlu1 %1300 }
  0xe5   :  { %v1479_v54 = vadd.f32 %v3745_v51, %v1440_v36  ;;  %v1296_v55 = vpop.permute.xlu0 %1295  ;;  %v1410_v56 = vmul.f32 %v3718_v30, %v1301_v43 }
  0xe6   :  { %v1478_v5 = vadd.f32 %v3745_v51, %v1439_v44  ;;  %v1409_v42 = vmul.f32 %v3718_v30, %v1296_v55  ;;  %v1217_v44 = vadd.f32 %v1185_v38, %v1021_v23 }
  0xe7   :  { %v1511_v6 = vmax.f32 %v1479_v54, 0.0  ;;  %v1442_v49 = vadd.f32 %v1410_v56, %v1214_v3  ;;  %v73_v56 = vadd.s32 40, %v3330_v10 }
  0xe8   :  { %v1510_v37 = vmax.f32 %v1478_v5, 0.0  ;;  %v1441_v20 = vadd.f32 %v1409_v42, %v1213_v46  ;;  %v1311_v35 = vpop.permute.xlu1 %1310 }
  0xe9   :  { %1544 = vst.msk [vmem:[#allocation2 + $0x58] sm:$0xff] %vm1532_vm1, %v1511_v6  ;;  %v1481_v39 = vadd.f32 %v3745_v51, %v1442_v49  ;;  %v1306_v15 = vpop.permute.xlu0 %1305  ;;  %v1412_v16 = vmul.f32 %v3718_v30, %v1311_v35  ;;  %v1683_v35 = vand.u32 15, %v73_v56 }
  0xea   :  { %1543 = vst.msk [vmem:[#allocation2 + $0x50] sm:$0xff] %vm1532_vm1, %v1510_v37  ;;  %v1480_v48 = vadd.f32 %v3745_v51, %v1441_v20  ;;  %v1411_v60 = vmul.f32 %v3718_v30, %v1306_v15 }
  0xeb   :  { %v1513_v12 = vmax.f32 %v1481_v39, 0.0  ;;  %v1444_v29 = vadd.f32 %v1412_v16, %v1216_v2  ;;  %vm1987_vm8 = vcmp.ge.s32.totalorder %v1683_v35, 15 }
  0xec   :  { %v1512_v18 = vmax.f32 %v1480_v48, 0.0  ;;  %v1443_v32 = vadd.f32 %v1411_v60, %v1215_v21  ;;  %v1321_v27 = vpop.permute.xlu1 %1320 }
  0xed   :  { %1546 = vst.msk [vmem:[#allocation2 + $0x68] sm:$0xff] %vm1532_vm1, %v1513_v12  ;;  %v1483_v47 = vadd.f32 %v3745_v51, %v1444_v29  ;;  %v1316_v36 = vpop.permute.xlu0 %1315  ;;  %v1414_v24 = vmul.f32 %v3718_v30, %v1321_v27 }
  0xee   :  { %1545 = vst.msk [vmem:[#allocation2 + $0x60] sm:$0xff] %vm1532_vm1, %v1512_v18  ;;  %v1482_v59 = vadd.f32 %v3745_v51, %v1443_v32  ;;  %v1413_v43 = vmul.f32 %v3718_v30, %v1316_v36  ;;  %v1697_v36 = vand.u32 15, %v3415_v53 }
  0xef   :  { %v1515_v3 = vmax.f32 %v1483_v47, 0.0  ;;  %v1446_v62 = vadd.f32 %v1414_v24, %v1218_v13  ;;  %v1704_v47 = vand.u32 15, %v3371_v28 }
  0xf0   :  { %v1514_v34 = vmax.f32 %v1482_v59, 0.0  ;;  %v1445_v54 = vadd.f32 %v1413_v43, %v1217_v44  ;;  %v3945_v55 = vpop.permute.xlu1 %938  ;;  %vm1989_vm10 = vcmp.ge.s32.totalorder %v1697_v36, 15 }
  0xf1   :  { %1548 = vst.msk [vmem:[#allocation2 + $0x78] sm:$0xff] %vm1532_vm1, %v1515_v3  ;;  %v1485_v46 = vadd.f32 %v3745_v51, %v1446_v62  ;;  %v3950_v14 = vpop.permute.xlu0 %933  ;;  %v1575_v5 = vld [vmem:[#allocation2 + $0x50] ss:$2 sm:$0xff]  ;;  %v1607_v42 = vld [vmem:[#allocation2 + $0x51] ss:$2 sm:$0xff]  ;;  %vm3983_vm9 = vcmp.lt.s32.totalorder %v1704_v47, 1 }
  0xf2   :  { %1547 = vst.msk [vmem:[#allocation2 + $0x70] sm:$0xff] %vm1532_vm1, %v1514_v34  ;;  %v1484_v1 = vadd.f32 %v3745_v51, %v1445_v54  ;;  %v1633_v6 = vmax.f32 %v1575_v5, %v1607_v42 }
  0xf3   :  { %v1517_v49 = vmax.f32 %v1485_v46, 0.0 }
  0xf4   :  { %v1516_v0 = vmax.f32 %v1484_v1, 0.0  ;;  %v3954_v37 = vpop.permute.xlu1 %948  ;;  %v3100_v20 = vpack.i.bf16 %v1633_v6, %v3872_v40  ;;  %v1863_v2 = vrot.slane %v1633_v6, 7  ;;  %v1942_v38 = vrot.slane %v1633_v6, 1 }
  0xf5   :  { %1550 = vst.msk [vmem:[#allocation2 + $0x88] sm:$0xff] %vm1532_vm1, %v1517_v49  ;;  %v3958_v22 = vpop.permute.xlu0 %943  ;;  %v1577_v39 = vld [vmem:[#allocation2 + $0x60] ss:$2 sm:$0xff]  ;;  %v1609_v15 = vld [vmem:[#allocation2 + $0x61] ss:$2 sm:$0xff] }
  0xf6   :  { %1549 = vst.msk [vmem:[#allocation2 + $0x80] sm:$0xff] %vm1532_vm1, %v1516_v0  ;;  %3101 = vrot.lane.b32.xlu0 %v3100_v20, %s3243_s2  ;;  %v1634_v16 = vmax.f32 %v1577_v39, %v1609_v15  ;;  %v3965_v21 = vsel %vm518_vm0, %v1861_v17, %v1863_v2  ;;  %v1943_v13 = vsel %vm678_vm4, %v1940_v33, %v1942_v38 }
  0xf8   :  { %v1115_v48 = vpop.permute.xlu1 %1114  ;;  %v1944_v60 = vrot.slane %v1634_v16, 1  ;;  %v1865_v26 = vrot.slane %v1634_v16, 7 }
  0xf9   :  { %v1111_v12 = vpop.permute.xlu0 %1110  ;;  %v1579_v29 = vld [vmem:[#allocation2 + $0x70] ss:$2 sm:$0xff]  ;;  %v1611_v23 = vld [vmem:[#allocation2 + $0x71] ss:$2 sm:$0xff] }
  0xfa   :  { %v1945_v18 = vsel %vm678_vm4, %v1942_v38, %v1944_v60  ;;  %v1635_v32 = vmax.f32 %v1579_v29, %v1611_v23  ;;  %v3969_v27 = vsel %vm518_vm0, %v1863_v2, %v1865_v26  ;;  %v1188_v38 = vmul.f32 %v3698_v4, %v1115_v48 }
  0xfb   :  { %v2003_v17 = vsel %vm1987_vm8, 0.0, %v1945_v18  ;;  %v1187_v29 = vmul.f32 %v3698_v4, %v1111_v12  ;;  %v1023_v23 = vmul.f32 %v3705_v8, %v3950_v14  ;;  %v1026_v12 = vmul.f32 %v3705_v8, %v3954_v37 }
  0xfc   :  { %v1123_v24 = vpop.permute.xlu1 %1122  ;;  %v3110_v44 = vpack.i.bf16 %v2003_v17, %v1943_v13  ;;  %v3105_v59 = vpack.i.bf16 %v1635_v32, %v1634_v16  ;;  %v1867_v34 = vrot.slane %v1635_v32, 7  ;;  %v1946_v40 = vrot.slane %v1635_v32, 1 }
  0xfd   :  { %v1119_v43 = vpop.permute.xlu0 %1118  ;;  %v1581_v3 = vld [vmem:[#allocation2 + $0x80] ss:$2 sm:$0xff]  ;;  %v1613_v62 = vld [vmem:[#allocation2 + $0x81] ss:$2 sm:$0xff]  ;;  %v1190_v13 = vmul.f32 %v3698_v4, %v1123_v24  ;;  %v1219_v36 = vadd.f32 %v1187_v29, %v1023_v23  ;;  %vm2514_vm8 = vcmask 785408  }
  0xfe   :  { %3111 = vrot.lane.b32.xlu0 %v3110_v44, %s3244_s19  ;;  %3106 = vrot.lane.b32.xlu1 %v3105_v59, %s3243_s2  ;;  %v3978_v54 = vmax.f32 %v1581_v3, %v1613_v62  ;;  %v3981_v33 = vsel %vm518_vm0, %v1865_v26, %v1867_v34  ;;  %v1947_v6 = vsel %vm678_vm4, %v1944_v60, %v1946_v40 }
  0xff   :  { %v1024_v60 = vmul.f32 %v3705_v8, %v3945_v55  ;;  %v1189_v44 = vmul.f32 %v3698_v4, %v1119_v43  ;;  %v1025_v55 = vmul.f32 %v3705_v8, %v3958_v22  ;;  %v1222_v62 = vadd.f32 %v1190_v13, %v1026_v12 }
 0x100   :  { %v959_v53 = vpop.permute.xlu1 %958  ;;  %v1948_v56 = vrot.slane %v3978_v54, 1  ;;  %v1869_v46 = vrot.slane %v3978_v54, 7 }
 0x101   :  { %v954_v5 = vpop.permute.xlu0 %953  ;;  %v1220_v32 = vadd.f32 %v1188_v38, %v1024_v60  ;;  %v1221_v43 = vadd.f32 %v1189_v44, %v1025_v55 }
 0x102   :  { %v1949_v42 = vsel %vm678_vm4, %v1946_v40, %v1948_v56  ;;  %v3995_v1 = vsel %vm518_vm0, %v1867_v34, %v1869_v46  ;;  %v1027_v29 = vmul.f32 %v3705_v8, %v954_v5 }
 0x103   :  { %v2005_v49 = vsel %vm1989_vm10, 0.0, %v1949_v42  ;;  %v1925_v0 = vsel %vm3983_vm9, 0.0, %v3995_v1 }
 0x104   :  { %v969_v20 = vpop.permute.xlu1 %968  ;;  %v3115_v35 = vpack.i.bf16 %v2005_v49, %v1947_v6 }
 0x105   :  { %v964_v2 = vpop.permute.xlu0 %963  ;;  %v1030_v44 = vmul.f32 %v3705_v8, %v969_v20 }
 0x106   :  { %3116 = vrot.lane.b32.xlu1 %v3115_v35, %s3244_s19  ;;  %v1028_v35 = vmul.f32 %v3705_v8, %v959_v53  ;;  %v1029_v12 = vmul.f32 %v3705_v8, %v964_v2 }
 0x108   :  { %v1131_v39 = vpop.permute.xlu1 %1130 }
 0x109   :  { %v1127_v15 = vpop.permute.xlu0 %1126  ;;  %v1192_v24 = vmul.f32 %v3698_v4, %v1131_v39 }
 0x10a   :  { %v1191_v6 = vmul.f32 %v3698_v4, %v1127_v15 }
 0x10c   :  { %v1139_v16 = vpop.permute.xlu1 %1138 }
 0x10d   :  { %v1135_v26 = vpop.permute.xlu0 %1134 }
 0x10e   :  { %v1193_v53 = vmul.f32 %v3698_v4, %v1135_v26 }
 0x110   :  { %v1331_v18 = vpop.permute.xlu1 %1330 }
 0x111   :  { %v1326_v17 = vpop.permute.xlu0 %1325  ;;  %v1416_v47 = vmul.f32 %v3718_v30, %v1331_v18  ;;  %v1224_v18 = vadd.f32 %v1192_v24, %v1028_v35 }
 0x112   :  { %v1415_v48 = vmul.f32 %v3718_v30, %v1326_v17 }
 0x113   :  { %v1448_v59 = vadd.f32 %v1416_v47, %v1220_v32  ;;  %v1194_v32 = vmul.f32 %v3698_v4, %v1139_v16  ;;  %v1223_v47 = vadd.f32 %v1191_v6, %v1027_v29 }
 0x114   :  { %v1447_v14 = vadd.f32 %v1415_v48, %v1219_v36  ;;  %v1341_v3 = vpop.permute.xlu1 %1340 }
 0x115   :  { %v1487_v34 = vadd.f32 %v3745_v51, %v1448_v59  ;;  %v1336_v40 = vpop.permute.xlu0 %1335  ;;  %v1418_v42 = vmul.f32 %v3718_v30, %v1341_v3  ;;  %v1226_v3 = vadd.f32 %v1194_v32, %v1030_v44 }
 0x116   :  { %v1486_v49 = vadd.f32 %v3745_v51, %v1447_v14  ;;  %v1417_v37 = vmul.f32 %v3718_v30, %v1336_v40 }
 0x117   :  { %v1519_v22 = vmax.f32 %v1487_v34, 0.0  ;;  %v1450_v38 = vadd.f32 %v1418_v42, %v1222_v62  ;;  %v1225_v34 = vadd.f32 %v1193_v53, %v1029_v12 }
 0x118   :  { %v1518_v60 = vmax.f32 %v1486_v49, 0.0  ;;  %v1449_v39 = vadd.f32 %v1417_v37, %v1221_v43  ;;  %v1351_v23 = vpop.permute.xlu1 %1350  ;;  %v77_v37 = vadd.s32 72, %v3330_v10 }
 0x119   :  { %1552 = vst.msk [vmem:[#allocation2 + $0x98] sm:$0xff] %vm1532_vm1, %v1519_v22  ;;  %v1489_v15 = vadd.f32 %v3745_v51, %v1450_v38  ;;  %v1346_v13 = vpop.permute.xlu0 %1345  ;;  %v1420_v17 = vmul.f32 %v3718_v30, %v1351_v23 }
 0x11a   :  { %1551 = vst.msk [vmem:[#allocation2 + $0x90] sm:$0xff] %vm1532_vm1, %v1518_v60  ;;  %v1488_v5 = vadd.f32 %v3745_v51, %v1449_v39  ;;  %v1419_v36 = vmul.f32 %v3718_v30, %v1346_v13  ;;  %v1711_v13 = vand.u32 15, %v77_v37 }
 0x11b   :  { %v1521_v48 = vmax.f32 %v1489_v15, 0.0  ;;  %v1452_v16 = vadd.f32 %v1420_v17, %v1224_v18 }
 0x11c   :  { %v1520_v59 = vmax.f32 %v1488_v5, 0.0  ;;  %v1451_v55 = vadd.f32 %v1419_v36, %v1223_v47  ;;  %v1361_v14 = vpop.permute.xlu1 %1360  ;;  %vm1991_vm11 = vcmp.ge.s32.totalorder %v1711_v13, 15 }
 0x11d   :  { %1554 = vst.msk [vmem:[#allocation2 + $0xa8] sm:$0xff] %vm1532_vm1, %v1521_v48  ;;  %v1491_v26 = vadd.f32 %v3745_v51, %v1452_v16  ;;  %v1356_v62 = vpop.permute.xlu0 %1355  ;;  %v1422_v24 = vmul.f32 %v3718_v30, %v1361_v14 }
 0x11e   :  { %1553 = vst.msk [vmem:[#allocation2 + $0xa0] sm:$0xff] %vm1532_vm1, %v1520_v59  ;;  %v1490_v20 = vadd.f32 %v3745_v51, %v1451_v55  ;;  %v1421_v40 = vmul.f32 %v3718_v30, %v1356_v62 }
 0x11f   :  { %v1523_v42 = vmax.f32 %v1491_v26, 0.0  ;;  %v1454_v2 = vadd.f32 %v1422_v24, %v1226_v3 }
 0x120   :  { %v1522_v43 = vmax.f32 %v1490_v20, 0.0  ;;  %v1453_v6 = vadd.f32 %v1421_v40, %v1225_v34  ;;  %v4040_v49 = vpop.permute.xlu1 %978  ;;  %v1732_v20 = vand.u32 15, %v3456_v9  ;;  %v1725_v40 = vand.u32 15, %v3508_v45 }
 0x121   :  { %1556 = vst.msk [vmem:[#allocation2 + $0xb8] sm:$0xff] %vm1532_vm1, %v1523_v42  ;;  %v1493_v35 = vadd.f32 %v3745_v51, %v1454_v2  ;;  %v4045_v22 = vpop.permute.xlu0 %973  ;;  %v1583_v38 = vld [vmem:[#allocation2 + $0x90] ss:$2 sm:$0xff]  ;;  %v1615_v29 = vld [vmem:[#allocation2 + $0x91] ss:$2 sm:$0xff] }
 0x122   :  { %1555 = vst.msk [vmem:[#allocation2 + $0xb0] sm:$0xff] %vm1532_vm1, %v1522_v43  ;;  %v1492_v60 = vadd.f32 %v3745_v51, %v1453_v6  ;;  %v1637_v39 = vmax.f32 %v1583_v38, %v1615_v29  ;;  %vm4078_vm12 = vcmp.lt.s32.totalorder %v1732_v20, 1  ;;  %vm1993_vm13 = vcmp.ge.s32.totalorder %v1725_v40, 15 }
 0x123   :  { %v1525_v23 = vmax.f32 %v1493_v35, 0.0 }
 0x124   :  { %v1524_v18 = vmax.f32 %v1492_v60, 0.0  ;;  %v4049_v32 = vpop.permute.xlu1 %988  ;;  %v3120_v15 = vpack.i.bf16 %v1637_v39, %v3978_v54  ;;  %v1871_v17 = vrot.slane %v1637_v39, 7  ;;  %v1950_v48 = vrot.slane %v1637_v39, 1 }
 0x125   :  { %1558 = vst.msk [vmem:[#allocation2 + $0xc8] sm:$0xff] %vm1532_vm1, %v1525_v23  ;;  %v4053_v47 = vpop.permute.xlu0 %983  ;;  %v1585_v53 = vld [vmem:[#allocation2 + $0xa0] ss:$2 sm:$0xff]  ;;  %v1617_v5 = vld [vmem:[#allocation2 + $0xa1] ss:$2 sm:$0xff] }
 0x126   :  { %1557 = vst.msk [vmem:[#allocation2 + $0xc0] sm:$0xff] %vm1532_vm1, %v1524_v18  ;;  %3121 = vrot.lane.b32.xlu0 %v3120_v15, %s3243_s2  ;;  %v1638_v36 = vmax.f32 %v1585_v53, %v1617_v5  ;;  %v4060_v44 = vsel %vm518_vm0, %v1869_v46, %v1871_v17  ;;  %v1951_v34 = vsel %vm678_vm4, %v1948_v56, %v1950_v48 }
 0x128   :  { %v1147_v16 = vpop.permute.xlu1 %1146  ;;  %v1952_v12 = vrot.slane %v1638_v36, 1  ;;  %v1873_v59 = vrot.slane %v1638_v36, 7 }
 0x129   :  { %v1143_v55 = vpop.permute.xlu0 %1142  ;;  %v1587_v14 = vld [vmem:[#allocation2 + $0xb0] ss:$2 sm:$0xff]  ;;  %v1619_v3 = vld [vmem:[#allocation2 + $0xb1] ss:$2 sm:$0xff] }
 0x12a   :  { %v1953_v26 = vsel %vm678_vm4, %v1950_v48, %v1952_v12  ;;  %v1639_v62 = vmax.f32 %v1587_v14, %v1619_v3  ;;  %v4064_v24 = vsel %vm518_vm0, %v1871_v17, %v1873_v59  ;;  %v1196_v48 = vmul.f32 %v3698_v4, %v1147_v16 }
 0x12b   :  { %v2007_v46 = vsel %vm1991_vm11, 0.0, %v1953_v26  ;;  %v1195_v14 = vmul.f32 %v3698_v4, %v1143_v55  ;;  %v1032_v3 = vmul.f32 %v3705_v8, %v4040_v49  ;;  %v1033_v49 = vmul.f32 %v3705_v8, %v4053_v47 }
 0x12c   :  { %v1155_v42 = vpop.permute.xlu1 %1154  ;;  %v3130_v2 = vpack.i.bf16 %v2007_v46, %v1951_v34  ;;  %v3125_v43 = vpack.i.bf16 %v1639_v62, %v1638_v36  ;;  %v1875_v38 = vrot.slane %v1639_v62, 7  ;;  %v1954_v54 = vrot.slane %v1639_v62, 1 }
 0x12d   :  { %v1151_v6 = vpop.permute.xlu0 %1150  ;;  %v1589_v37 = vld [vmem:[#allocation2 + $0xc0] ss:$2 sm:$0xff]  ;;  %v1621_v35 = vld [vmem:[#allocation2 + $0xc1] ss:$2 sm:$0xff]  ;;  %v1228_v62 = vadd.f32 %v1196_v48, %v1032_v3  ;;  %v1198_v34 = vmul.f32 %v3698_v4, %v1155_v42 }
 0x12e   :  { %3131 = vrot.lane.b32.xlu0 %v3130_v2, %s3244_s19  ;;  %3126 = vrot.lane.b32.xlu1 %v3125_v43, %s3243_s2  ;;  %v4073_v29 = vmax.f32 %v1589_v37, %v1621_v35  ;;  %v4076_v56 = vsel %vm518_vm0, %v1873_v59, %v1875_v38  ;;  %v1955_v13 = vsel %vm678_vm4, %v1952_v12, %v1954_v54  ;;  %v70_v35 = vadd.s32 16, %v3330_v10 }
 0x12f   :  { %v1031_v12 = vmul.f32 %v3705_v8, %v4045_v22  ;;  %v1197_v16 = vmul.f32 %v3698_v4, %v1151_v6  ;;  %v1034_v2 = vmul.f32 %v3705_v8, %v4049_v32 }
 0x130   :  { %v999_v45 = vpop.permute.xlu1 %998  ;;  %v1956_v60 = vrot.slane %v4073_v29, 1  ;;  %v1877_v39 = vrot.slane %v4073_v29, 7 }
 0x131   :  { %v994_v23 = vpop.permute.xlu0 %993  ;;  %v1227_v40 = vadd.f32 %v1195_v14, %v1031_v12  ;;  %v1230_v42 = vadd.f32 %v1198_v34, %v1034_v2  ;;  %v1036_v47 = vmul.f32 %v3705_v8, %v999_v45 }
 0x132   :  { %v1957_v18 = vsel %vm678_vm4, %v1954_v54, %v1956_v60  ;;  %v4090_v15 = vsel %vm518_vm0, %v1875_v38, %v1877_v39  ;;  %v1035_v3 = vmul.f32 %v3705_v8, %v994_v23 }
 0x133   :  { %v2009_v17 = vsel %vm1993_vm13, 0.0, %v1957_v18  ;;  %v1929_v53 = vsel %vm4078_vm12, 0.0, %v4090_v15 }
 0x134   :  { %v1163_v5 = vpop.permute.xlu1 %1162  ;;  %v3135_v36 = vpack.i.bf16 %v2009_v17, %v1955_v13  ;;  %v1229_v13 = vadd.f32 %v1197_v16, %v1033_v49 }
 0x135   :  { %v1159_v59 = vpop.permute.xlu0 %1158  ;;  %v1200_v38 = vmul.f32 %v3698_v4, %v1163_v5 }
 0x136   :  { %3136 = vrot.lane.b32.xlu1 %v3135_v36, %s3244_s19  ;;  %v1199_v17 = vmul.f32 %v3698_v4, %v1159_v59 }
 0x138   :  { %v1371_v26 = vpop.permute.xlu1 %1370  ;;  %v1231_v59 = vadd.f32 %v1199_v17, %v1035_v3 }
 0x139   :  { %v1366_v46 = vpop.permute.xlu0 %1365  ;;  %v1424_v20 = vmul.f32 %v3718_v30, %v1371_v26 }
 0x13a   :  { %v1423_v55 = vmul.f32 %v3718_v30, %v1366_v46 }
 0x13b   :  { %v1456_v43 = vadd.f32 %v1424_v20, %v1228_v62  ;;  %v1232_v62 = vadd.f32 %v1200_v38, %v1036_v47 }
 0x13c   :  { %v1455_v22 = vadd.f32 %v1423_v55, %v1227_v40  ;;  %v1381_v37 = vpop.permute.xlu1 %1380  ;;  %v1662_v40 = vand.u32 15, %v70_v35 }
 0x13d   :  { %v1495_v54 = vadd.f32 %v3745_v51, %v1456_v43  ;;  %v1376_v18 = vpop.permute.xlu0 %1375  ;;  %v1426_v6 = vmul.f32 %v3718_v30, %v1381_v37 }
 0x13e   :  { %v1494_v32 = vadd.f32 %v3745_v51, %v1455_v22  ;;  %v1425_v36 = vmul.f32 %v3718_v30, %v1376_v18  ;;  %vm4130_vm14 = vcmp.lt.s32.totalorder %v1662_v40, 1 }
 0x13f   :  { %v1527_v48 = vmax.f32 %v1495_v54, 0.0  ;;  %v1458_v14 = vadd.f32 %v1426_v6, %v1230_v42  ;;  %v81_v54 = vadd.s32 104, %v3330_v10  ;;  %v1919_v18 = vsel %vm4130_vm14, 0.0, %v3849_v7 }
 0x140   :  { %v1526_v12 = vmax.f32 %v1494_v32, 0.0  ;;  %v1457_v5 = vadd.f32 %v1425_v36, %v1229_v13  ;;  %v1391_v26 = vpop.permute.xlu1 %1390 }
 0x141   :  { %1560 = vst.msk [vmem:[#allocation2 + $0xd8] sm:$0xff] %vm1532_vm1, %v1527_v48  ;;  %v1497_v34 = vadd.f32 %v3745_v51, %v1458_v14  ;;  %v1386_v46 = vpop.permute.xlu0 %1385  ;;  %v1428_v4 = vmul.f32 %v3718_v30, %v1391_v26 }
 0x142   :  { %1559 = vst.msk [vmem:[#allocation2 + $0xd0] sm:$0xff] %vm1532_vm1, %v1526_v12  ;;  %v1496_v45 = vadd.f32 %v3745_v51, %v1457_v5  ;;  %v1427_v20 = vmul.f32 %v3718_v30, %v1386_v46  ;;  %v1739_v5 = vand.u32 15, %v81_v54  ;;  %v1753_v46 = vand.u32 15, %v3515_v50 }
 0x143   :  { %v1529_v8 = vmax.f32 %v1497_v34, 0.0  ;;  %v1460_v23 = vadd.f32 %v1428_v4, %v1232_v62 }
 0x144   :  { %v1528_v16 = vmax.f32 %v1496_v45, 0.0  ;;  %v1459_v55 = vadd.f32 %v1427_v20, %v1231_v59  ;;  %v3087_v2 = vpop.permute.xlu1 %3086  ;;  %v1648_v59 = vand.u32 15, %v3330_v10  ;;  %vm1995_vm2 = vcmp.ge.s32.totalorder %v1739_v5, 15 }
 0x145   :  { %1562 = vst.msk [vmem:[#allocation2 + $0xe8] sm:$0xff] %vm1532_vm1, %v1529_v8  ;;  %v1499_v43 = vadd.f32 %v3745_v51, %v1460_v23  ;;  %v3089_v37 = vunpack.i.h.bf16 %v3087_v2  ;;  %v3088_v30 = vunpack.i.l.bf16 %v3087_v2  ;;  %v3082_v3 = vpop.permute.xlu0 %3081  ;;  %vm4154_vm3 = vcmp.ge.s32.totalorder %v1753_v46, 15 }
 0x146   :  { %1561 = vst.msk [vmem:[#allocation2 + $0xe0] sm:$0xff] %vm1532_vm1, %v1528_v16  ;;  %v1498_v49 = vadd.f32 %v3745_v51, %v1459_v55  ;;  %vm4165_vm5 = vcmp.lt.s32.totalorder %v1648_v59, 1  ;;  %v74_v5 = vadd.s32 48, %v3330_v10 }
 0x147   :  { %v1531_v35 = vmax.f32 %v1499_v43, 0.0  ;;  %v2129_v32 = vsel %vm1532_vm1, %v3875_v61, %v3089_v37  ;;  %v2128_v36 = vsel %vm1532_vm1, %v1919_v18, %v3088_v30  ;;  %v3083_v18 = vunpack.i.l.bf16 %v3082_v3 }
 0x148   :  { %v1530_v42 = vmax.f32 %v1498_v49, 0.0  ;;  %v3097_v38 = vpop.permute.xlu1 %3096  ;;  %v3084_v49 = vunpack.i.h.bf16 %v3082_v3  ;;  %v78_v37 = vadd.s32 80, %v3330_v10 }
 0x149   :  { %1564 = vst.msk [vmem:[#allocation2 + $0xf8] sm:$0xff] %vm1532_vm1, %v1531_v35  ;;  %v3099_v6 = vunpack.i.h.bf16 %v3097_v38  ;;  %v3098_v51 = vunpack.i.l.bf16 %v3097_v38  ;;  %v1591_v13 = vld [vmem:[#allocation2 + $0xd0] ss:$2 sm:$0xff]  ;;  %v1623_v17 = vld [vmem:[#allocation2 + $0xd1] ss:$2 sm:$0xff]  ;;  %v3092_v50 = vpop.permute.xlu0 %3091 }
 0x14a   :  { %1563 = vst.msk [vmem:[#allocation2 + $0xf0] sm:$0xff] %vm1532_vm1, %v1530_v42  ;;  %v1641_v47 = vmax.f32 %v1591_v13, %v1623_v17  ;;  %v3094_v54 = vunpack.i.h.bf16 %v3092_v50 }
 0x14b   :  { %v2145_v48 = vsel %vm2142_vm15, %v2128_v36, %v3098_v51  ;;  %v2146_v14 = vsel %vm2142_vm15, %v2129_v32, %v3099_v6  ;;  %v3093_v51 = vunpack.i.l.bf16 %v3092_v50 }
 0x14c   :  { %v2160_v12 = vpack.c.bf16 %v2146_v14, %v2145_v48  ;;  %v3140_v7 = vpack.i.bf16 %v1641_v47, %v4073_v29  ;;  %v1879_v34 = vrot.slane %v1641_v47, 7  ;;  %v1958_v4 = vrot.slane %v1641_v47, 1 }
 0x14d   :  { %v1593_v26 = vld [vmem:[#allocation2 + $0xe0] ss:$2 sm:$0xff]  ;;  %v1625_v62 = vld [vmem:[#allocation2 + $0xe1] ss:$2 sm:$0xff] }
 0x14e   :  { %3141 = vrot.lane.b32.xlu0 %v3140_v7, %s3243_s2  ;;  %v1642_v61 = vmax.f32 %v1593_v26, %v1625_v62  ;;  %v4152_v45 = vsel %vm518_vm0, %v1877_v39, %v1879_v34  ;;  %v1959_v39 = vsel %vm678_vm4, %v1956_v60, %v1958_v4 }
 0x150   :  { %v1960_v20 = vrot.slane %v1642_v61, 1  ;;  %v1881_v40 = vrot.slane %v1642_v61, 7 }
 0x151   :  { %v1595_v8 = vld [vmem:[#allocation2 + $0xf0] ss:$2 sm:$0xff]  ;;  %v1627_v23 = vld [vmem:[#allocation2 + $0xf1] ss:$2 sm:$0xff] }
 0x152   :  { %v1961_v55 = vsel %vm678_vm4, %v1958_v4, %v1960_v20  ;;  %v1643_v2 = vmax.f32 %v1595_v8, %v1627_v23  ;;  %v4160_v43 = vsel %vm518_vm0, %v1879_v34, %v1881_v40 }
 0x153   :  { %v2011_v22 = vsel %vm1995_vm2, 0.0, %v1961_v55 }
 0x154   :  { %v3150_v30 = vpack.i.bf16 %v2011_v22, %v1959_v39  ;;  %v3145_v35 = vpack.i.bf16 %v1643_v2, %v1642_v61  ;;  %v1962_v42 = vrot.slane %v1643_v2, 1  ;;  %v1837_v38 = vrot.slane %v1643_v2, 7 }
 0x155   :  { %v1690_v61 = vand.u32 15, %v74_v5 }
 0x156   :  { %3151 = vrot.lane.b32.xlu0 %v3150_v30, %s3244_s19  ;;  %3146 = vrot.lane.b32.xlu1 %v3145_v35, %s3243_s2  ;;  %v1963_v6 = vsel %vm678_vm4, %v1960_v20, %v1962_v42  ;;  %v1981_v29 = vsel %vm678_vm4, %v1962_v42, %v1933_v19  ;;  %v1900_v60 = vsel %vm518_vm0, %v1837_v38, %v1854_v58  ;;  %vm2198_vm4 = vcmask 392192  }
 0x157   :  { %v2013_v13 = vsel %vm4154_vm3, 0.0, %v1981_v29  ;;  %v1917_v17 = vsel %vm4165_vm5, 0.0, %v1900_v60  ;;  %v4183_v32 = vsel %vm518_vm0, %v1881_v40, %v1837_v38  ;;  %v2127_v19 = vsel %vm1532_vm1, %v3863_v31, %v3084_v49 }
 0x158   :  { %v3155_v36 = vpack.i.bf16 %v2013_v13, %v1963_v6  ;;  %v2126_v47 = vsel %vm1532_vm1, %v1917_v17, %v3083_v18  ;;  %v2144_v58 = vsel %vm2142_vm15, %v2127_v19, %v3094_v54  ;;  %vm1907_vm0 = vcmp.lt.s32.totalorder %v1690_v61, 1 }
 0x159   :  { %v2143_v25 = vsel %vm2142_vm15, %v2126_v47, %v3093_v51  ;;  %v1923_v57 = vsel %vm1907_vm0, 0.0, %v3969_v27  ;;  %v1718_v38 = vand.u32 15, %v78_v37  ;;  %v3180_v37 = vld [vmem:[%s4461_s5] ss:$8 sps:$4 sm:$0xff]  }
 0x15a   :  { %3156 = vrot.lane.b32.xlu1 %v3155_v36, %s3244_s19  ;;  %v2159_v48 = vpack.c.bf16 %v2144_v58, %v2143_v25  ;;  %v82_v25 = vadd.s32 112, %v3330_v10 }
 0x15b   :  { %vm1911_vm6 = vcmp.lt.s32.totalorder %v1718_v38, 1  ;;  %v3189_v38 = vld [vmem:[%s4461_s5 + $0x30] ss:$8 sps:$4 sm:$0xff]  }
 0x15c   :  { %3057 = vmatprep.mubr.msk.bf16.mxu0 %vm2198_vm4, %v2159_v48  ;;  %v1927_v1 = vsel %vm1911_vm6, 0.0, %v4064_v24  ;;  %v1746_v48 = vand.u32 15, %v82_v25 }
 0x15d   :  { %3058 = vmatmul.mubr.msk.bf16.vlgmr.msra.gmra.mrb[0].mxu0 %vm2198_vm4, %v2160_v12 }
 0x15e   :  { %vm1915_vm7 = vcmp.lt.s32.totalorder %v1746_v48, 1  ;;  %v3198_v48 = vld [vmem:[%s4461_s5 + $0x60] ss:$8 sps:$4 sm:$0xff]  }
 0x168   :  { %v3102_v14 = vpop.permute.xlu0 %3101 }
 0x169   :  { %v3104_v3 = vunpack.i.h.bf16 %v3102_v14  ;;  %v3103_v7 = vunpack.i.l.bf16 %v3102_v14 }
 0x16b   :  { %v2130_v34 = vsel %vm1532_vm1, %v1921_v11, %v3103_v7  ;;  %v2131_v46 = vsel %vm1532_vm1, %v3965_v21, %v3104_v3 }
 0x170   :  { %v3112_v26 = vpop.permute.xlu0 %3111  ;;  %v3107_v59 = vpop.permute.xlu1 %3106 }
 0x171   :  { %v3114_v62 = vunpack.i.h.bf16 %v3112_v26  ;;  %v3113_v31 = vunpack.i.l.bf16 %v3112_v26  ;;  %v3109_v40 = vunpack.i.h.bf16 %v3107_v59  ;;  %v3108_v8 = vunpack.i.l.bf16 %v3107_v59 }
 0x172   :  { %v1931_v59 = vsel %vm1915_vm7, 0.0, %v4160_v43  ;;  %v4250_v43 = vld [vmem:[%s4460_s4] ss:$0 sm:$0xff] }
 0x173   :  { %v2148_v12 = vsel %vm2142_vm15, %v2131_v46, %v3114_v62  ;;  %v2147_v4 = vsel %vm2142_vm15, %v2130_v34, %v3113_v31  ;;  %v2133_v21 = vsel %vm1532_vm1, %v3981_v33, %v3109_v40  ;;  %v2132_v16 = vsel %vm1532_vm1, %v1923_v57, %v3108_v8 }
 0x174   :  { %v2161_v20 = vpack.c.bf16 %v2148_v12, %v2147_v4 }
 0x176   :  { %3061 = vmatprep.mubr.msk.bf16.mxu0 %vm2198_vm4, %v2161_v20 }
 0x178   :  { %v3117_v41 = vpop.permute.xlu1 %3116 }
 0x179   :  { %v3119_v23 = vunpack.i.h.bf16 %v3117_v41  ;;  %v3118_v11 = vunpack.i.l.bf16 %v3117_v41 }
 0x17b   :  { %v2149_v50 = vsel %vm2142_vm15, %v2132_v16, %v3118_v11  ;;  %v2150_v55 = vsel %vm2142_vm15, %v2133_v21, %v3119_v23 }
 0x17c   :  { %v2162_v2 = vpack.c.bf16 %v2150_v55, %v2149_v50 }
 0x17e   :  { %3062 = vmatmul.mubr.msk.bf16.gmra.mrb[4].mxu0 %vm2198_vm4, %v2162_v2 }
 0x198   :  { %v3122_v49 = vpop.permute.xlu0 %3121 }
 0x199   :  { %v3124_v39 = vunpack.i.h.bf16 %v3122_v49  ;;  %v3123_v22 = vunpack.i.l.bf16 %v3122_v49 }
 0x19b   :  { %v2134_v33 = vsel %vm1532_vm1, %v1925_v0, %v3123_v22  ;;  %v2135_v42 = vsel %vm1532_vm1, %v4060_v44, %v3124_v39  ;;  %v3178_v22 = vld [vmem:[%s4461_s5 + $0x4] ss:$8 sps:$4 sm:$0xff]  }
 0x19c   :  { %2725 = vmatprep.subr.bf16.mxu1 %v3178_v22 }
 0x19d   :  { %2726 = vmatpush1.bf16.msra.mxu1 %v3180_v37 }
 0x1a0   :  { %v3132_v27 = vpop.permute.xlu0 %3131  ;;  %v3127_v6 = vpop.permute.xlu1 %3126 }
 0x1a1   :  { %v3134_v30 = vunpack.i.h.bf16 %v3132_v27  ;;  %v3133_v35 = vunpack.i.l.bf16 %v3132_v27  ;;  %v3129_v60 = vunpack.i.h.bf16 %v3127_v6  ;;  %v3128_v51 = vunpack.i.l.bf16 %v3127_v6  ;;  %v3181_v27 = vld [vmem:[%s4461_s5 + $0x14] ss:$8 sps:$4 sm:$0xff]  }
 0x1a2   :  { %2727 = vmatprep.subr.bf16.mxu1 %v3181_v27 }
 0x1a3   :  { %v2152_v54 = vsel %vm2142_vm15, %v2135_v42, %v3134_v30  ;;  %v2151_v18 = vsel %vm2142_vm15, %v2134_v33, %v3133_v35  ;;  %v2137_v44 = vsel %vm1532_vm1, %v4076_v56, %v3129_v60  ;;  %v2136_v17 = vsel %vm1532_vm1, %v1927_v1, %v3128_v51  ;;  %v3183_v30 = vld [vmem:[%s4461_s5 + $0x10] ss:$8 sps:$4 sm:$0xff]   ;;  %v3184_v35 = vld [vmem:[%s4461_s5 + $0x24] ss:$8 sps:$4 sm:$0xff]   ;;  %v3186_v33 = vld [vmem:[%s4461_s5 + $0x20] ss:$8 sps:$4 sm:$0xff]  }
 0x1a4   :  { %v2163_v29 = vpack.c.bf16 %v2152_v54, %v2151_v18  ;;  %2728 = vmatpush1.bf16.msra.mxu1 %v3183_v30  ;;  %v3187_v42 = vld [vmem:[%s4461_s5 + $0x34] ss:$8 sps:$4 sm:$0xff]   ;;  %v3190_v54 = vld [vmem:[%s4461_s5 + $0x44] ss:$8 sps:$4 sm:$0xff]   ;;  %v3192_v60 = vld [vmem:[%s4461_s5 + $0x40] ss:$8 sps:$4 sm:$0xff]  }
 0x1a5   :  { %2729 = vmatprep.subr.bf16.mxu1 %v3184_v35  ;;  %v3193_v1 = vld [vmem:[%s4461_s5 + $0x54] ss:$8 sps:$4 sm:$0xff]  }
 0x1a6   :  { %3065 = vmatprep.mubr.msk.bf16.mxu0 %vm2198_vm4, %v2163_v29 }
 0x1a8   :  { %v3137_v28 = vpop.permute.xlu1 %3136  ;;  %2730 = vmatpush1.bf16.msra.mxu1 %v3186_v33 }
 0x1a9   :  { %v3139_v13 = vunpack.i.h.bf16 %v3137_v28  ;;  %v3138_v0 = vunpack.i.l.bf16 %v3137_v28  ;;  %2731 = vmatprep.subr.bf16.mxu1 %v3187_v42 }
 0x1ab   :  { %v2153_v36 = vsel %vm2142_vm15, %v2136_v17, %v3138_v0  ;;  %v2154_v47 = vsel %vm2142_vm15, %v2137_v44, %v3139_v13 }
 0x1ac   :  { %v2164_v19 = vpack.c.bf16 %v2154_v47, %v2153_v36  ;;  %2732 = vmatpush1.bf16.msra.mxu1 %v3189_v38 }
 0x1ad   :  { %2733 = vmatprep.subr.bf16.mxu1 %v3190_v54 }
 0x1ae   :  { %3066 = vmatmul.mubr.msk.bf16.gmra.mrb[8].mxu0 %vm2198_vm4, %v2164_v19  ;;  %v3195_v19 = vld [vmem:[%s4461_s5 + $0x50] ss:$8 sps:$4 sm:$0xff]  }
 0x1b0   :  { %2734 = vmatpush1.bf16.msra.mxu1 %v3192_v60 }
 0x1b1   :  { %2735 = vmatprep.subr.bf16.mxu1 %v3193_v1 }
 0x1b4   :  { %2736 = vmatpush1.bf16.msra.mxu1 %v3195_v19 }
 0x1c0   :  { %v3142_v58 = vpop.permute.xlu0 %3141 }
 0x1c1   :  { %v3144_v14 = vunpack.i.h.bf16 %v3142_v58  ;;  %v3143_v24 = vunpack.i.l.bf16 %v3142_v58  ;;  %v3196_v58 = vld [vmem:[%s4461_s5 + $0x64] ss:$8 sps:$4 sm:$0xff]  }
 0x1c2   :  { %2737 = vmatprep.subr.bf16.mxu1 %v3196_v58 }
 0x1c3   :  { %v2138_v56 = vsel %vm1532_vm1, %v1929_v53, %v3143_v24  ;;  %v2139_v62 = vsel %vm1532_vm1, %v4152_v45, %v3144_v14  ;;  %v3199_v14 = vld [vmem:[%s4461_s5 + $0x74] ss:$8 sps:$4 sm:$0xff]   ;;  %2738 = vmatpush1.bf16.msra.mxu1 %v3198_v48  ;;  %v3201_v24 = vld [vmem:[%s4461_s5 + $0x70] ss:$8 sps:$4 sm:$0xff]  }
 0x1c4   :  { %2739 = vmatprep.subr.bf16.mxu1 %v3199_v14 }
 0x1c7   :  { %2740 = vmatpush1.bf16.msra.mxu1 %v3201_v24 }
 0x1c8   :  { %v3152_v3 = vpop.permute.xlu0 %3151  ;;  %v3147_v7 = vpop.permute.xlu1 %3146 }
 0x1c9   :  { %v3154_v5 = vunpack.i.h.bf16 %v3152_v3  ;;  %v3153_v26 = vunpack.i.l.bf16 %v3152_v3  ;;  %v3149_v31 = vunpack.i.h.bf16 %v3147_v7  ;;  %v3148_v34 = vunpack.i.l.bf16 %v3147_v7  ;;  %v3202_v3 = vld [vmem:[%s4461_s5 + $0x84] ss:$8 sps:$4 sm:$0xff]   ;;  %v3204_v7 = vld [vmem:[%s4461_s5 + $0x80] ss:$8 sps:$4 sm:$0xff]  }
 0x1ca   :  { %2741 = vmatprep.subr.bf16.mxu1 %v3202_v3 }
 0x1cb   :  { %v2156_v46 = vsel %vm2142_vm15, %v2139_v62, %v3154_v5  ;;  %v2155_v61 = vsel %vm2142_vm15, %v2138_v56, %v3153_v26  ;;  %v2141_v9 = vsel %vm1532_vm1, %v4183_v32, %v3149_v31  ;;  %v2140_v15 = vsel %vm1532_vm1, %v1931_v59, %v3148_v34  ;;  %v3205_v5 = vld [vmem:[%s4461_s5 + $0x94] ss:$8 sps:$4 sm:$0xff]   ;;  %2742 = vmatpush1.bf16.msra.mxu1 %v3204_v7  ;;  %v3207_v26 = vld [vmem:[%s4461_s5 + $0x90] ss:$8 sps:$4 sm:$0xff]   ;;  %v3208_v56 = vld [vmem:[%s4461_s5 + $0xa4] ss:$8 sps:$4 sm:$0xff]  }
 0x1cc   :  { %v2165_v12 = vpack.c.bf16 %v2156_v46, %v2155_v61  ;;  %v3157_v4 = vpop.permute.xlu1 %3156  ;;  %2743 = vmatprep.subr.bf16.mxu1 %v3205_v5  ;;  %v3210_v62 = vld [vmem:[%s4461_s5 + $0xa0] ss:$8 sps:$4 sm:$0xff]   ;;  %v3211_v31 = vld [vmem:[%s4461_s5 + $0xb4] ss:$8 sps:$4 sm:$0xff]   ;;  %v3213_v34 = vld [vmem:[%s4461_s5 + $0xb0] ss:$8 sps:$4 sm:$0xff]  }
 0x1cd   :  { %v3159_v20 = vunpack.i.h.bf16 %v3157_v4  ;;  %v3158_v40 = vunpack.i.l.bf16 %v3157_v4  ;;  %v3214_v46 = vld [vmem:[%s4461_s5 + $0xc4] ss:$8 sps:$4 sm:$0xff]   ;;  %v3216_v61 = vld [vmem:[%s4461_s5 + $0xc0] ss:$8 sps:$4 sm:$0xff]   ;;  %v3219_v4 = vld [vmem:[%s4461_s5 + $0xd0] ss:$8 sps:$4 sm:$0xff]  }
 0x1ce   :  { %3069 = vmatprep.mubr.msk.bf16.mxu0 %vm2198_vm4, %v2165_v12  ;;  %v3217_v12 = vld [vmem:[%s4461_s5 + $0xd4] ss:$8 sps:$4 sm:$0xff]   ;;  %vm2512_vm1 = vcmask 523264  }
 0x1cf   :  { %v2157_v53 = vsel %vm2142_vm15, %v2140_v15, %v3158_v40  ;;  %v2158_v45 = vsel %vm2142_vm15, %v2141_v9, %v3159_v20  ;;  %2744 = vmatpush1.bf16.msra.mxu1 %v3207_v26 }
 0x1d0   :  { %v2166_v8 = vpack.c.bf16 %v2158_v45, %v2157_v53  ;;  %2745 = vmatprep.subr.bf16.mxu1 %v3208_v56 }
 0x1d2   :  { %3070 = vmatmul.mubr.msk.bf16.gmra.mrb[12].mxu0 %vm2198_vm4, %v2166_v8 }
 0x1d3   :  { %2746 = vmatpush1.bf16.msra.mxu1 %v3210_v62 }
 0x1d4   :  { %2747 = vmatprep.subr.bf16.mxu1 %v3211_v31 }
 0x1d7   :  { %2748 = vmatpush1.bf16.msra.mxu1 %v3213_v34 }
 0x1d8   :  { %2749 = vmatprep.subr.bf16.mxu1 %v3214_v46 }
 0x1db   :  { %2750 = vmatpush1.bf16.msra.mxu1 %v3216_v61 }
 0x1dc   :  { %2751 = vmatprep.subr.bf16.mxu1 %v3217_v12 }
 0x1df   :  { %2752 = vmatpush1.bf16.msra.mxu1 %v3219_v4 }
 0x230   :  { %v3059_v41 = vpop.f32.mrb[0].mxu0 }
 0x231   :  { %v2266_v57 = vadd.f32 %v3059_v41, %v4250_v43  ;;  %v2257_v32 = vpop.f32.mrb[1].mxu0 }
 0x232   :  { %v2258_v23 = vadd.f32 %v4250_v43, %v2257_v32  ;;  %v3060_v11 = vpop.f32.mrb[2].mxu0 }
 0x233   :  { %v2322_v21 = vmax.f32 %v2266_v57, 0.0  ;;  %v2269_v16 = vadd.f32 %v3060_v11, %v4250_v43  ;;  %v2260_v50 = vpop.f32.mrb[3].mxu0 }
 0x234   :  { %v2320_v55 = vmax.f32 %v2258_v23, 0.0  ;;  %v2261_v2 = vadd.f32 %v4250_v43, %v2260_v50 }
 0x235   :  { %2338 = vst.msk [vmem:[#allocation3 + $0x10] sm:$0xff] %vm2142_vm15, %v2322_v21  ;;  %v2323_v49 = vmax.f32 %v2269_v16, 0.0 }
 0x236   :  { %2336 = vst.msk [vmem:[#allocation3] sm:$0xff] %vm2142_vm15, %v2320_v55  ;;  %v2321_v39 = vmax.f32 %v2261_v2, 0.0 }
 0x237   :  { %2339 = vst.msk [vmem:[#allocation3 + $0x18] sm:$0xff] %vm2142_vm15, %v2323_v49 }
 0x238   :  { %2337 = vst.msk [vmem:[#allocation3 + $0x8] sm:$0xff] %vm2142_vm15, %v2321_v39 }
 0x23d   :  { %v2386_v60 = vld [vmem:[#allocation3 + $0x4] ss:$16 sm:$0x3]  ;;  %v2369_v1 = vld [vmem:[#allocation3 + $0x2] ss:$16 sm:$0x3] }
 0x23e   :  { %v2403_v7 = vld [vmem:[#allocation3 + $0x6] ss:$16 sm:$0x3]  ;;  %v2411_v5 = vld [vmem:[#allocation3 + $0x7] ss:$16 sm:$0x3] }
 0x23f   :  { %v2445_v58 = vld [vmem:[#allocation3 + $0xb] ss:$16 sm:$0x3]  ;;  %v2471_v61 = vld [vmem:[#allocation3 + $0xe] ss:$16 sm:$0x3] }
 0x240   :  { %v2479_v12 = vld [vmem:[#allocation3 + $0xf] ss:$16 sm:$0x3] }
 0x251   :  { %v3063_v18 = vpop.f32.mrb[4].mxu0 }
 0x252   :  { %v2282_v6 = vadd.f32 %v3063_v18, %v4250_v43  ;;  %v2273_v29 = vpop.f32.mrb[5].mxu0 }
 0x253   :  { %v2274_v51 = vadd.f32 %v4250_v43, %v2273_v29  ;;  %v3064_v28 = vpop.f32.mrb[6].mxu0 }
 0x254   :  { %v2326_v13 = vmax.f32 %v2282_v6, 0.0  ;;  %v2285_v0 = vadd.f32 %v3064_v28, %v4250_v43  ;;  %v2276_v44 = vpop.f32.mrb[7].mxu0 }
 0x255   :  { %v2324_v17 = vmax.f32 %v2274_v51, 0.0  ;;  %v2277_v36 = vadd.f32 %v4250_v43, %v2276_v44  ;;  %v2394_v51 = vld [vmem:[#allocation3 + $0x5] ss:$16 sm:$0x3] }
 0x256   :  { %2342 = vst.msk [vmem:[#allocation3 + $0x30] sm:$0xff] %vm2142_vm15, %v2326_v13  ;;  %v2327_v47 = vmax.f32 %v2285_v0, 0.0  ;;  %v2377_v13 = vld [vmem:[#allocation3 + $0x3] ss:$16 sm:$0x3] }
 0x257   :  { %2340 = vst.msk [vmem:[#allocation3 + $0x20] sm:$0xff] %vm2142_vm15, %v2324_v17  ;;  %v2325_v25 = vmax.f32 %v2277_v36, 0.0  ;;  %v2454_v17 = vld [vmem:[#allocation3 + $0xc] ss:$16 sm:$0x3] }
 0x258   :  { %2343 = vst.msk [vmem:[#allocation3 + $0x38] sm:$0xff] %vm2142_vm15, %v2327_v47  ;;  %v2462_v36 = vld [vmem:[#allocation3 + $0xd] ss:$16 sm:$0x3] }
 0x259   :  { %2341 = vst.msk [vmem:[#allocation3 + $0x28] sm:$0xff] %vm2142_vm15, %v2325_v25  ;;  %v2437_v25 = vld [vmem:[#allocation3 + $0xa] ss:$16 sm:$0x3] }
 0x25e   :  { %v2387_v30 = vld [vmem:[#allocation3 + $0x4] ss:$16 sm:$0xc]  ;;  %v2395_v35 = vld [vmem:[#allocation3 + $0x5] ss:$16 sm:$0xc] }
 0x25f   :  { %v2370_v33 = vld [vmem:[#allocation3 + $0x2] ss:$16 sm:$0xc]  ;;  %v2378_v42 = vld [vmem:[#allocation3 + $0x3] ss:$16 sm:$0xc]  ;;  %v2388_v26 = vor.u32 %v2387_v30, %v2386_v60  ;;  %v2396_v56 = vor.u32 %v2395_v35, %v2394_v51 }
 0x260   :  { %v2455_v54 = vld [vmem:[#allocation3 + $0xc] ss:$16 sm:$0xc]  ;;  %v2463_v18 = vld [vmem:[#allocation3 + $0xd] ss:$16 sm:$0xc]  ;;  %v2371_v62 = vor.u32 %v2370_v33, %v2369_v1  ;;  %v2379_v31 = vor.u32 %v2378_v42, %v2377_v13 }
 0x261   :  { %v4366_v6 = vld [vmem:[#allocation3 + $0xa] ss:$16 sm:$0xc]  ;;  %v4368_v29 = vld [vmem:[#allocation3 + $0xb] ss:$16 sm:$0xc]  ;;  %v2456_v4 = vor.u32 %v2455_v54, %v2454_v17 }
 0x262   :  { %v2404_v0 = vld [vmem:[#allocation3 + $0x6] ss:$16 sm:$0xc]  ;;  %v2412_v44 = vld [vmem:[#allocation3 + $0x7] ss:$16 sm:$0xc] }
 0x263   :  { %v2472_v48 = vld [vmem:[#allocation3 + $0xe] ss:$16 sm:$0xc]  ;;  %v2480_v14 = vld [vmem:[#allocation3 + $0xf] ss:$16 sm:$0xc] }
 0x281   :  { %v3067_v59 = vpop.f32.mrb[8].mxu0 }
 0x282   :  { %v2298_v20 = vadd.f32 %v3067_v59, %v4250_v43  ;;  %v2289_v40 = vpop.f32.mrb[9].mxu0  ;;  %v2464_v59 = vor.u32 %v2463_v18, %v2462_v36 }
 0x283   :  { %v2290_v9 = vadd.f32 %v4250_v43, %v2289_v40  ;;  %v3068_v15 = vpop.f32.mrb[10].mxu0  ;;  %v2447_v40 = vor.u32 %v4368_v29, %v2445_v58 }
 0x284   :  { %v2330_v53 = vmax.f32 %v2298_v20, 0.0  ;;  %v2301_v45 = vadd.f32 %v3068_v15, %v4250_v43  ;;  %v2292_v8 = vpop.f32.mrb[11].mxu0  ;;  %v2439_v20 = vor.u32 %v4366_v6, %v2437_v25 }
 0x285   :  { %v2328_v41 = vmax.f32 %v2290_v9, 0.0  ;;  %v2293_v57 = vadd.f32 %v4250_v43, %v2292_v8  ;;  %v2405_v8 = vor.u32 %v2404_v0, %v2403_v7 }
 0x286   :  { %2346 = vst.msk [vmem:[#allocation3 + $0x50] sm:$0xff] %vm2142_vm15, %v2330_v53  ;;  %v2331_v32 = vmax.f32 %v2301_v45, 0.0 }
 0x287   :  { %2344 = vst.msk [vmem:[#allocation3 + $0x40] sm:$0xff] %vm2142_vm15, %v2328_v41  ;;  %v2329_v23 = vmax.f32 %v2293_v57, 0.0  ;;  %v2413_v41 = vor.u32 %v2412_v44, %v2411_v5 }
 0x288   :  { %2347 = vst.msk [vmem:[#allocation3 + $0x58] sm:$0xff] %vm2142_vm15, %v2331_v32 }
 0x289   :  { %2345 = vst.msk [vmem:[#allocation3 + $0x48] sm:$0xff] %vm2142_vm15, %v2329_v23  ;;  %v3220_v23 = vld [vmem:[%s4461_s5 + $0xe4] ss:$8 sps:$4 sm:$0xff]  }
 0x28a   :  { %2753 = vmatprep.subr.bf16.mxu1 %v3220_v23  ;;  %v2353_v23 = vld [vmem:[#allocation3] ss:$16 sm:$0xc] }
 0x28e   :  { %v2397_v28 = vld [vmem:[#allocation3 + $0x5] ss:$16 sm:$0x30]  ;;  %v2372_v47 = vld [vmem:[#allocation3 + $0x2] ss:$16 sm:$0x30] }
 0x28f   :  { %v2380_v19 = vld [vmem:[#allocation3 + $0x3] ss:$16 sm:$0x30]  ;;  %v2406_v9 = vld [vmem:[#allocation3 + $0x6] ss:$16 sm:$0x30]  ;;  %v2398_v45 = vor.u32 %v2397_v28, %v2396_v56 }
 0x290   :  { %v2457_v24 = vld [vmem:[#allocation3 + $0xc] ss:$16 sm:$0x30]  ;;  %v2465_v3 = vld [vmem:[#allocation3 + $0xd] ss:$16 sm:$0x30]  ;;  %v2407_v28 = vor.u32 %v2406_v9, %v2405_v8 }
 0x291   :  { %v2440_v34 = vld [vmem:[#allocation3 + $0xa] ss:$16 sm:$0x30]  ;;  %v2448_v46 = vld [vmem:[#allocation3 + $0xb] ss:$16 sm:$0x30] }
 0x292   :  { %v2414_v15 = vld [vmem:[#allocation3 + $0x7] ss:$16 sm:$0x30]  ;;  %v2474_v57 = vld [vmem:[#allocation3 + $0xe] ss:$16 sm:$0x30]  ;;  %v2441_v18 = vor.u32 %v2440_v34, %v2439_v20  ;;  %v2449_v6 = vor.u32 %v2448_v46, %v2447_v40 }
 0x293   :  { %v2482_v32 = vld [vmem:[#allocation3 + $0xf] ss:$16 sm:$0x30]  ;;  %v2415_v1 = vor.u32 %v2414_v15, %v2413_v41  ;;  %v3230_v9 = vld [vmem:[%s4462_s7 + $0x50] sm:$0xff]   ;;  %v3234_v8 = vld [vmem:[%s4462_s7 + $0x60] sm:$0xff]  }
 0x294   :  { %v3229_v40 = vld [vmem:[%s4462_s7 + $0x8] sm:$0xff]   ;;  %v3231_v15 = vld [vmem:[%s4462_s7 + $0x10] sm:$0xff]   ;;  %v3235_v41 = vld [vmem:[%s4462_s7 + $0x20] sm:$0xff]  }
 0x2a5   :  { %v3071_v11 = vpop.f32.mrb[12].mxu0 }
 0x2a6   :  { %v2314_v21 = vadd.f32 %v3071_v11, %v4250_v43  ;;  %v2305_v16 = vpop.f32.mrb[13].mxu0  ;;  %v3222_v11 = vld [vmem:[%s4461_s5 + $0xe0] ss:$8 sps:$4 sm:$0xff]  }
 0x2a7   :  { %v2306_v50 = vadd.f32 %v4250_v43, %v2305_v16  ;;  %v3072_v55 = vpop.f32.mrb[14].mxu0  ;;  %2754 = vmatpush1.bf16.msra.mxu1 %v3222_v11  ;;  %v2361_v11 = vld [vmem:[#allocation3 + $0x1] ss:$16 sm:$0xc] }
 0x2a8   :  { %v2334_v2 = vmax.f32 %v2314_v21, 0.0  ;;  %v2317_v49 = vadd.f32 %v3072_v55, %v4250_v43  ;;  %v2308_v39 = vpop.f32.mrb[15].mxu0  ;;  %v2381_v55 = vor.u32 %v2380_v19, %v2379_v31  ;;  %v3225_v31 = vld [vmem:[%s4461_s5 + $0xf0] ss:$8 sps:$4 sm:$0xff]  }
 0x2a9   :  { %v2332_v22 = vmax.f32 %v2306_v50, 0.0  ;;  %v2309_v37 = vadd.f32 %v4250_v43, %v2308_v39  ;;  %v2389_v43 = vld [vmem:[#allocation3 + $0x4] ss:$16 sm:$0x30]  ;;  %v2373_v50 = vor.u32 %v2372_v47, %v2371_v62 }
 0x2aa   :  { %2350 = vst.msk [vmem:[#allocation3 + $0x70] sm:$0xff] %vm2142_vm15, %v2334_v2  ;;  %v2335_v27 = vmax.f32 %v2317_v49, 0.0  ;;  %v2390_v53 = vor.u32 %v2389_v43, %v2388_v26  ;;  %v2473_v2 = vor.u32 %v2472_v48, %v2471_v61  ;;  %v2481_v49 = vor.u32 %v2480_v14, %v2479_v12  ;;  %v3223_v62 = vld [vmem:[%s4461_s5 + $0xf4] ss:$8 sps:$4 sm:$0xff]   ;;  %v3226_v61 = vld [vmem:[%s4462_s7 + $0x40] sm:$0xff]  }
 0x2ab   :  { %2348 = vst.msk [vmem:[#allocation3 + $0x60] sm:$0xff] %vm2142_vm15, %v2332_v22  ;;  %v2333_v38 = vmax.f32 %v2309_v37, 0.0  ;;  %v2458_v37 = vor.u32 %v2457_v24, %v2456_v4  ;;  %2755 = vmatprep.subr.bf16.mxu1 %v3223_v62  ;;  %v3227_v4 = vld [vmem:[%s4462_s7] sm:$0xff]   ;;  %3029 = vmatprep.subr.bf16.mxu0 %v3226_v61  ;;  %v3238_v61 = vld [vmem:[%s4462_s7 + $0x70] sm:$0xff]  }
 0x2ac   :  { %2351 = vst.msk [vmem:[#allocation3 + $0x78] sm:$0xff] %vm2142_vm15, %v2335_v27  ;;  %v2466_v27 = vor.u32 %v2465_v3, %v2464_v59  ;;  %v2475_v36 = vor.u32 %v2474_v57, %v2473_v2  ;;  %v2483_v47 = vor.u32 %v2482_v32, %v2481_v49  ;;  %2756 = vmatpush1.bf16.msra.mxu1 %v3225_v31  ;;  %v3228_v59 = vld [vmem:[%s4462_s7 + $0x48] sm:$0xff]  }
 0x2ad   :  { %2349 = vst.msk [vmem:[#allocation3 + $0x68] sm:$0xff] %vm2142_vm15, %v2333_v38  ;;  %3030 = vmatpush3.bf16.msra.mxu0 %v3227_v4  ;;  %v3236_v57 = vld [vmem:[%s4462_s7 + $0x68] sm:$0xff]   ;;  %v3240_v4 = vld [vmem:[%s4462_s7 + $0x78] sm:$0xff]  }
 0x2ae   :  { %3031 = vmatprep.subr.bf16.mxu0 %v3228_v59  ;;  %v3237_v32 = vld [vmem:[%s4462_s7 + $0x28] sm:$0xff]   ;;  %v3241_v59 = vld [vmem:[%s4462_s7 + $0x38] sm:$0xff]  }
 0x2af   :  { %v2428_v2 = vld [vmem:[#allocation3 + $0x9] ss:$16 sm:$0x3] }
 0x2b0   :  { %v2429_v49 = vld [vmem:[#allocation3 + $0x9] ss:$16 sm:$0xc] }
 0x2b1   :  { %3032 = vmatpush3.bf16.msra.mxu0 %v3229_v40 }
 0x2b2   :  { %v2391_v21 = vld [vmem:[#allocation3 + $0x4] ss:$16 sm:$0xc0]  ;;  %v2399_v16 = vld [vmem:[#allocation3 + $0x5] ss:$16 sm:$0xc0]  ;;  %3033 = vmatprep.subr.bf16.mxu0 %v3230_v9 }
 0x2b3   :  { %v2392_v39 = vor.u32 %v2391_v21, %v2390_v53  ;;  %v2400_v22 = vor.u32 %v2399_v16, %v2398_v45  ;;  %v2374_v30 = vld [vmem:[#allocation3 + $0x2] ss:$16 sm:$0xc0]  ;;  %v2382_v35 = vld [vmem:[#allocation3 + $0x3] ss:$16 sm:$0xc0] }
 0x2b4   :  { %v2459_v33 = vld [vmem:[#allocation3 + $0xc] ss:$16 sm:$0xc0]  ;;  %v2467_v42 = vld [vmem:[#allocation3 + $0xd] ss:$16 sm:$0xc0]  ;;  %v2375_v38 = vor.u32 %v2374_v30, %v2373_v50  ;;  %v2383_v54 = vor.u32 %v2382_v35, %v2381_v55 }
 0x2b5   :  { %v2460_v29 = vor.u32 %v2459_v33, %v2458_v37  ;;  %v2468_v60 = vor.u32 %v2467_v42, %v2466_v27  ;;  %v2442_v43 = vld [vmem:[#allocation3 + $0xa] ss:$16 sm:$0xc0]  ;;  %v2450_v51 = vld [vmem:[#allocation3 + $0xb] ss:$16 sm:$0xc0]  ;;  %v2401_v19 = vmax.f32 %v2392_v39, %v2400_v22  ;;  %3034 = vmatpush3.bf16.msra.mxu0 %v3231_v15 }
 0x2b6   :  { %v2443_v13 = vor.u32 %v2442_v43, %v2441_v18  ;;  %v2451_v0 = vor.u32 %v2450_v51, %v2449_v6  ;;  %v2408_v44 = vld [vmem:[#allocation3 + $0x6] ss:$16 sm:$0xc0]  ;;  %v2416_v17 = vld [vmem:[#allocation3 + $0x7] ss:$16 sm:$0xc0]  ;;  %v2384_v58 = vmax.f32 %v2375_v38, %v2383_v54  ;;  %v2430_v54 = vor.u32 %v2429_v49, %v2428_v2 }
 0x2b7   :  { %v2469_v25 = vmax.f32 %v2460_v29, %v2468_v60  ;;  %v2409_v48 = vor.u32 %v2408_v44, %v2407_v28  ;;  %v2476_v14 = vld [vmem:[#allocation3 + $0xe] ss:$16 sm:$0xc0]  ;;  %v2484_v24 = vld [vmem:[#allocation3 + $0xf] ss:$16 sm:$0xc0]  ;;  %v2417_v7 = vor.u32 %v2416_v17, %v2415_v1 }
 0x2b8   :  { %v2452_v3 = vmax.f32 %v2443_v13, %v2451_v0  ;;  %v2477_v5 = vor.u32 %v2476_v14, %v2475_v36  ;;  %v2485_v26 = vor.u32 %v2484_v24, %v2483_v47  ;;  %v3232_v53 = vld [vmem:[%s4462_s7 + $0x58] sm:$0xff]   ;;  %v2352_v21 = vld [vmem:[#allocation3] ss:$16 sm:$0x3] }
 0x2b9   :  { %v3165_v56 = vpack.i.bf16 %v2401_v19, %v2469_v25  ;;  %v2418_v12 = vmax.f32 %v2409_v48, %v2417_v7  ;;  %v3233_v45 = vld [vmem:[%s4462_s7 + $0x18] sm:$0xff]   ;;  %3035 = vmatprep.subr.bf16.mxu0 %v3232_v53  ;;  %v2360_v16 = vld [vmem:[#allocation3 + $0x1] ss:$16 sm:$0x3]  ;;  %v2354_v33 = vor.u32 %v2353_v23, %v2352_v21 }
 0x2ba   :  { %v3160_v34 = vpack.i.bf16 %v2384_v58, %v2452_v3  ;;  %v2486_v46 = vmax.f32 %v2477_v5, %v2485_v26  ;;  %3036 = vmatpush3.bf16.msra.mxu0 %v3233_v45  ;;  %v2420_v50 = vld [vmem:[#allocation3 + $0x8] ss:$16 sm:$0x3]  ;;  %v2355_v39 = vld [vmem:[#allocation3] ss:$16 sm:$0x30]  ;;  %v2362_v42 = vor.u32 %v2361_v11, %v2360_v16 }
 0x2bb   :  { %3166 = vrot.lane.b32.xlu1 %v3165_v56, %s3245_s20  ;;  %3037 = vmatprep.subr.bf16.mxu0 %v3234_v8  ;;  %v2421_v55 = vld [vmem:[#allocation3 + $0x8] ss:$16 sm:$0xc]  ;;  %v2363_v22 = vld [vmem:[#allocation3 + $0x1] ss:$16 sm:$0x30]  ;;  %v2356_v29 = vor.u32 %v2355_v39, %v2354_v33 }
 0x2bc   :  { %3161 = vrot.lane.b32.xlu0 %v3160_v34, %s3244_s19  ;;  %v3170_v20 = vpack.i.bf16 %v2418_v12, %v2486_v46  ;;  %v2423_v37 = vld [vmem:[#allocation3 + $0x8] ss:$16 sm:$0x30]  ;;  %v2431_v27 = vld [vmem:[#allocation3 + $0x9] ss:$16 sm:$0x30]  ;;  %v2422_v38 = vor.u32 %v2421_v55, %v2420_v50  ;;  %v2364_v60 = vor.u32 %v2363_v22, %v2362_v42 }
 0x2bd   :  { %v2357_v30 = vld [vmem:[#allocation3] ss:$16 sm:$0xc0]  ;;  %v2365_v35 = vld [vmem:[#allocation3 + $0x1] ss:$16 sm:$0xc0]  ;;  %v2432_v51 = vor.u32 %v2431_v27, %v2430_v54 }
 0x2be   :  { %3038 = vmatpush3.bf16.msra.mxu0 %v3235_v41  ;;  %v2425_v18 = vld [vmem:[#allocation3 + $0x8] ss:$16 sm:$0xc0]  ;;  %v2433_v6 = vld [vmem:[#allocation3 + $0x9] ss:$16 sm:$0xc0]  ;;  %v2424_v43 = vor.u32 %v2423_v37, %v2422_v38  ;;  %v2358_v28 = vor.u32 %v2357_v30, %v2356_v29  ;;  %v2366_v1 = vor.u32 %v2365_v35, %v2364_v60 }
 0x2bf   :  { %3039 = vmatprep.subr.bf16.mxu0 %v3236_v57  ;;  %v2434_v0 = vor.u32 %v2433_v6, %v2432_v51  ;;  %v3239_v12 = vld [vmem:[%s4462_s7 + $0x30] sm:$0xff]  }
 0x2c0   :  { %3171 = vrot.lane.b32.xlu0 %v3170_v20, %s3246_s27  ;;  %v2426_v13 = vor.u32 %v2425_v18, %v2424_v43  ;;  %v2367_v19 = vmax.f32 %v2358_v28, %v2366_v1  ;;  %v2553_v20 = vld [vmem:[%s4463_s6] sm:$0x3] }
 0x2c1   :  { %v2558_v40 = vrot.slane %v2553_v20, %v1003_v63  ;;  %v2562_v9 = vrot.slane %v2553_v20, %v1167_v52  ;;  %v3001_v52 = vld [vmem:[%s4465_s8] ss:$0 sm:$0xff] }
 0x2c2   :  { %3040 = vmatpush3.bf16.msra.mxu0 %v3237_v32  ;;  %v2435_v25 = vmax.f32 %v2426_v13, %v2434_v0 }
 0x2c3   :  { %3041 = vmatprep.subr.bf16.mxu0 %v3238_v61 }
 0x2c6   :  { %3042 = vmatpush3.bf16.msra.mxu0 %v3239_v12 }
 0x2c7   :  { %3043 = vmatprep.subr.bf16.mxu0 %v3240_v4 }
 0x2ca   :  { %3044 = vmatpush3.bf16.msra.mxu0 %v3241_v59 }
 0x32d   :  { %v3167_v44 = vpop.permute.xlu1 %3166 }
 0x32e   :  { %v3162_v17 = vpop.permute.xlu0 %3161  ;;  %v3169_v58 = vunpack.i.h.bf16 %v3167_v44  ;;  %v3168_v48 = vunpack.i.l.bf16 %v3167_v44 }
 0x32f   :  { %v3164_v36 = vunpack.i.h.bf16 %v3162_v17  ;;  %v3163_v47 = vunpack.i.l.bf16 %v3162_v17 }
 0x331   :  { %v2511_v14 = vsel %vm2142_vm15, %v2367_v19, %v3164_v36  ;;  %v2516_v24 = vsel %vm2142_vm15, %v2435_v25, %v3163_v47 }
 0x332   :  { %v3172_v3 = vpop.permute.xlu0 %3171  ;;  %v2517_v26 = vsel %vm2512_vm1, %v2516_v24, %v3168_v48  ;;  %v2513_v56 = vsel %vm2512_vm1, %v2511_v14, %v3169_v58 }
 0x333   :  { %v3174_v7 = vunpack.i.h.bf16 %v3172_v3  ;;  %v3173_v5 = vunpack.i.l.bf16 %v3172_v3 }
 0x335   :  { %v2518_v62 = vsel %vm2514_vm8, %v2517_v26, %v3173_v5  ;;  %v2515_v31 = vsel %vm2514_vm8, %v2513_v56, %v3174_v7 }
 0x336   :  { %v2520_v34 = vpack.c.bf16 %v2518_v62, %v2518_v62  ;;  %v2519_v46 = vpack.c.bf16 %v2515_v31, %v2515_v31 }
 0x338   :  { %2757 = vmatprep.mubr.bf16.mxu1 %v2520_v34 }
 0x339   :  { %2758 = vmatmul.mubr.bf16.vlgmr.msra.gmra.mrb[0].mxu1 %v2519_v46 }
 0x40c   :  { %v2759_v15 = vpop.f32.mrb[0].mxu1 }
 0x40d   :  { %v2760_v53 = vadd.f32 %v2759_v15, %v2558_v40  ;;  %v2761_v45 = vpop.f32.mrb[1].mxu1 }
 0x40e   :  { %v2762_v8 = vadd.f32 %v2761_v45, %v2562_v9  ;;  %v2763_v41 = vpop.f32.mrb[2].mxu1 }
 0x40f   :  { %v2766_v57 = vmax.f32 %v2760_v53, 0.0  ;;  %v2764_v32 = vpop.f32.mrb[3].mxu1 }
 0x410   :  { %v2767_v23 = vmax.f32 %v2762_v8, 0.0 }
 0x411   :  { %2768 = vst [vmem:[%s4464_s10] sm:$0xff] %v2766_v57  ;;  %v2770_v11 = vpack.c.bf16 %v2766_v57, %v2766_v57 }
 0x412   :  { %2769 = vst [vmem:[%s4464_s10 + $0x8] sm:$0xff] %v2767_v23  ;;  %v2771_v63 = vpack.c.bf16 %v2767_v23, %v2767_v23 }
 0x414   :  { %2939 = vmatprep.mubr.bf16.mxu0 %v2771_v63 }
 0x415   :  { %2940 = vmatmul.mubr.bf16.vlgmr.msra.gmra.mrb[16].mxu0 %v2770_v11 }
 0x4e8   :  { %v3045_v10 = vpop.f32.mrb[16].mxu0 }
 0x4e9   :  { %v3046_v21 = vpop.f32.mrb[17].mxu0 }
 0x4ea   :  { %v3047_v16 = vadd.f32 %v3046_v21, %v3045_v10  ;;  %v3048_v50 = vpop.f32.mrb[18].mxu0 }
 0x4eb   :  { %v3049_v55 = vpop.f32.mrb[19].mxu0 }
 0x4ec   :  { %v2942_v2 = vadd.f32 %v3047_v16, %v3001_v52 }
 0x4ee   :  { %2947 = vst [vmem:[%s4466_s9] sm:$0xff] %v2942_v2 }

</bundles_post_ra>
